<compile_context>
chip_gen: v7x
topology: tpu7x:2x2x1
jax: 0.10.0
libtpu: 0.0.40
codegen_flags: <defaults>
</compile_context>

<pallas_src>
import math
import numpy as np
import jax
import jax.numpy as jnp
from jax import lax
from jax.experimental import pallas as pl

# ---------------- model config (small synthetic shapes) ----------------
VOCAB = 16
DIM = 32
HEADS = 2
DEPTH = 2
N_VEC = 8
N_CLASS = 4
DIM_HEAD = DIM                                    # module passes dim_head=dim
INNER_DIM = HEADS * DIM_HEAD
NB_FEATURES = int(DIM_HEAD * math.log(DIM_HEAD))  # performer_pytorch default (=110)
NB_FEATURES_PAD = 128                             # lane-dense padded feature dim
FF_MULT = 4

_RATIO = NB_FEATURES ** -0.5                      # keep M=110 normalization
_EPS_FEAT = 1e-4
_EPS_DEN = 1e-6
_LN_EPS = 1e-5
_GELU_C = 0.7978845608028654                      # sqrt(2/pi)


def _gelu_tanh(x):
    # TODO(synk): tanh-approx GELU (EUP tanh); reference nn.GELU is exact-erf GELU.
    return 0.5 * x * (1.0 + jnp.tanh(_GELU_C * (x + 0.044715 * x * x * x)))


# ---------------- the single fused kernel ----------------
def _performer_net_kernel(x_ref, cmask_ref, fmask_ref,
                          ln1g_ref, ln1b_ref, wattn_ref, battn_ref,
                          wo_ref, bo_ref,
                          ln2g_ref, ln2b_ref, w1_ref, b1_ref, w2_ref, b2_ref,
                          wf_ref, fb_ref, o_ref):
    BN, D = x_ref.shape
    N = N_VEC
    B = BN // N
    H = HEADS
    Dh = DIM_HEAD
    INNER = H * Dh
    MP = NB_FEATURES_PAD

    x = x_ref[...]                                 # [BN, D] residual stream (f32)
    cmask = cmask_ref[...]                         # [BN, BN] block-causal {0,1} (f32)
    fmask = fmask_ref[...]                         # [1, MP]  real-feature lanes {0,1}
    neg_pad = (fmask - 1.0) * 1e30                 # 0 on real lanes, -1e30 on padded
    neg_pad2 = jnp.concatenate([neg_pad] * H, axis=1)   # [1, H*MP]

    for l in range(DEPTH):
        # ---------- attention sublayer: x + Wo(FAVOR+(LN(x))) ----------
        mu = jnp.mean(x, axis=-1, keepdims=True)
        var = jnp.mean((x - mu) ** 2, axis=-1, keepdims=True)
        xn = (x - mu) * lax.rsqrt(var + _LN_EPS) * ln1g_ref[l] + ln1b_ref[l]

        # one bf16 MXU matmul for q-features(h0,h1), k-features(h0,h1), v, dn*q, dn*k
        big = jnp.dot(xn.astype(jnp.bfloat16), wattn_ref[l],
                      preferred_element_type=jnp.float32) + battn_ref[l]   # [BN, 704]

        qd = big[:, :H * MP]                       # [BN, 256] (128-aligned per head)
        kd = big[:, H * MP:2 * H * MP]             # [BN, 256]
        base = 2 * H * MP
        v_all = big[:, base:base + INNER]          # [BN, 64]
        qdn = big[:, base + INNER:base + 2 * INNER]        # dn*q, for diag terms
        kdn = big[:, base + 2 * INNER:base + 3 * INNER]    # dn*k

        # key stabilizer: per-batch max over (heads, positions, features)
        k_row_max = jnp.max(kd + neg_pad2, axis=-1, keepdims=True)         # [BN, 1]
        parts = []
        for b in range(B):                         # B=2, unrolled
            mb = jnp.max(k_row_max[b * N:(b + 1) * N], axis=0, keepdims=True)
            parts.append(jnp.broadcast_to(mb, (N, 1)))
        k_stab = jnp.concatenate(parts, axis=0)                            # [BN, 1]

        y = x + bo_ref[l]                          # residual + out-proj bias
        head_outs = []
        for h in range(H):                         # HEADS=2, unrolled
            qd_h = qd[:, h * MP:(h + 1) * MP]
            kd_h = kd[:, h * MP:(h + 1) * MP]
            v_h = v_all[:, h * Dh:(h + 1) * Dh]
            qdn_h = qdn[:, h * Dh:(h + 1) * Dh]
            kdn_h = kdn[:, h * Dh:(h + 1) * Dh]

            q_diag = 0.5 * jnp.sum(qdn_h * qdn_h, axis=-1, keepdims=True)
            k_diag = 0.5 * jnp.sum(kdn_h * kdn_h, axis=-1, keepdims=True)
            q_stab = jnp.max(qd_h + neg_pad, axis=-1, keepdims=True)

            # FAVOR+ softmax-kernel features; padded lanes forced to exact zero
            qp = _RATIO * (jnp.exp(qd_h - q_diag - q_stab + neg_pad) + _EPS_FEAT) * fmask
            kp = _RATIO * (jnp.exp(kd_h - k_diag - k_stab + neg_pad) + _EPS_FEAT) * fmask

            # causal linear attention via masked scores (prefix-sum form)
            s = lax.dot_general(qp.astype(jnp.bfloat16), kp.astype(jnp.bfloat16),
                                (((1,), (1,)), ((), ())),
                                preferred_element_type=jnp.float32)        # [BN, BN]
            s = s * cmask
            num = jnp.dot(s.astype(jnp.bfloat16), v_h.astype(jnp.bfloat16),
                          preferred_element_type=jnp.float32)              # [BN, Dh]
            den = (jnp.sum(s, axis=-1, keepdims=True)
                   + _EPS_DEN * jnp.sum(qp, axis=-1, keepdims=True))
            head_outs.append(num * pl.reciprocal(den, approx=True))

        out_cat = jnp.concatenate(head_outs, axis=1)                       # [BN, INNER]
        x = y + jnp.dot(out_cat.astype(jnp.bfloat16), wo_ref[l],
                        preferred_element_type=jnp.float32)

        # ---------- feed-forward sublayer: x + W2(GELU(W1(LN(x)))) ----------
        mu2 = jnp.mean(x, axis=-1, keepdims=True)
        var2 = jnp.mean((x - mu2) ** 2, axis=-1, keepdims=True)
        xn2 = (x - mu2) * lax.rsqrt(var2 + _LN_EPS) * ln2g_ref[l] + ln2b_ref[l]
        hid = jnp.dot(xn2.astype(jnp.bfloat16), w1_ref[l],
                      preferred_element_type=jnp.float32) + b1_ref[l]      # [BN, 4D]
        hid = _gelu_tanh(hid)
        x = x + jnp.dot(hid.astype(jnp.bfloat16), w2_ref[l],
                        preferred_element_type=jnp.float32) + b2_ref[l]

    # ---------- final classifier: logits[b,c] = sum_{n,d} x[bN+n,d]*wf[c,n,d] + fb[c]
    # (elementwise multiply + reduce avoids any in-kernel [N,D]->[1,N*D] reshape and
    #  keeps the MXU free; everything stays in vregs until the single [B, C] store).
    rows = []
    for b in range(B):
        xb = x[b * N:(b + 1) * N, :]
        cols = []
        for c in range(N_CLASS):
            t = jnp.sum(xb * wf_ref[c], axis=-1, keepdims=True)            # [N, 1]
            cols.append(jnp.sum(t, axis=0, keepdims=True))                 # [1, 1]
        rows.append(jnp.concatenate(cols, axis=1))                         # [1, C]
    o_ref[...] = jnp.concatenate(rows, axis=0) + fb_ref[...]               # [B, C]


# ---------------- host-side wrappers ----------------
def _masks(B):
    BN = B * N_VEC
    idx = np.arange(BN)
    same = (idx[:, None] // N_VEC) == (idx[None, :] // N_VEC)
    causal = (idx[None, :] % N_VEC) <= (idx[:, None] % N_VEC)
    cmask = jnp.asarray((same & causal).astype(np.float32))                # [BN, BN]
    fmask = jnp.asarray(
        (np.arange(NB_FEATURES_PAD) < NB_FEATURES).astype(np.float32)[None, :])
    return cmask, fmask


def fused_performer_head(h2d, params, B):
    """Single pallas_call: DEPTH Performer layers + final classifier."""
    cmask, fmask = _masks(B)
    # NOTE: grid-less on purpose at B=2; a grid=(B,) "parallel" axis (v7x 2nd core)
    # only pays off once B is larger.
    return pl.pallas_call(
        _performer_net_kernel,
        out_shape=jax.ShapeDtypeStruct((B, N_CLASS), jnp.float32),
    )(h2d, cmask, fmask,
      params["ln1_g"], params["ln1_b"], params["wattn"], params["battn"],
      params["wo"], params["bo"],
      params["ln2_g"], params["ln2_b"], params["w1"], params["b1"],
      params["w2"], params["b2"], params["wf3"], params["fb"])


def performer_head_forward(params, x, problem):
    B = x.shape[0]
    if problem == "adding":
        # tiny [B*N, 2] @ [2, D] input linear kept in XLA (not the exercised path)
        h2d = (x.reshape(-1, 2).astype(jnp.float32) @ params["linear_w"]
               + params["linear_b"])
    else:
        # TODO(synk): embedding gather + positional add stay as a tiny XLA preamble;
        # could be fused in-kernel via a one-hot matmul if needed.
        emb = params["encoder"][x[..., 0]]                                 # [B, N, D]
        h2d = (emb + params["posenc"][None, :, :]).reshape(B * N_VEC, DIM)
    return fused_performer_head(h2d, params, B)


# ---------------- deterministic parameter init (with weight pre-folding) ----------------
def init_params(key):
    keys = jax.random.split(key, 4 + DEPTH)

    def nrm(k, shape, scale=0.02):
        return scale * jax.random.normal(k, shape, dtype=jnp.float32)

    params = {
        "encoder": nrm(keys[0], (VOCAB, DIM), 1.0),
        "posenc": nrm(keys[1], (N_VEC, DIM), 1.0),
        "linear_w": nrm(keys[3], (2, DIM)),
        "linear_b": jnp.zeros((1, DIM), jnp.float32),
    }
    final_w = nrm(keys[2], (N_VEC * DIM, N_CLASS))
    # classifier weight rearranged for the in-kernel reduce: wf3[c,n,d] = final_w[n*D+d, c]
    params["wf3"] = jnp.transpose(final_w.reshape(N_VEC, DIM, N_CLASS), (2, 0, 1))
    params["fb"] = jnp.zeros((1, N_CLASS), jnp.float32)

    dn = DIM_HEAD ** -0.25
    ones_d = jnp.ones((1, DIM), jnp.float32)
    zeros_d = jnp.zeros((1, DIM), jnp.float32)
    wattn_l, battn_l, wo_l, bo_l = [], [], [], []
    w1_l, b1_l, w2_l, b2_l = [], [], [], []
    ln1g_l, ln1b_l, ln2g_l, ln2b_l = [], [], [], []
    for i in range(DEPTH):
        lk = jax.random.split(keys[4 + i], 8)
        wq = nrm(lk[0], (DIM, INNER_DIM))
        wk = nrm(lk[1], (DIM, INNER_DIM))
        wv = nrm(lk[2], (DIM, INNER_DIM))
        wo = nrm(lk[3], (INNER_DIM, DIM))
        # TODO(synk): plain Gaussian random features; performer_pytorch uses Gaussian-
        # orthogonal (QR-block) features.
        proj = jax.random.normal(lk[4], (NB_FEATURES, DIM_HEAD), dtype=jnp.float32)
        projt_p = jnp.pad(proj.T, ((0, 0), (0, NB_FEATURES_PAD - NB_FEATURES)))  # [Dh,128]
        # Fold data_normalizer + per-head random-feature projection into one weight so one
        # MXU matmul yields [q_feat(h0)|q_feat(h1)|k_feat(h0)|k_feat(h1)|v|dn*q|dn*k].
        wqf = jnp.concatenate(
            [dn * wq[:, h * DIM_HEAD:(h + 1) * DIM_HEAD] @ projt_p for h in range(HEADS)],
            axis=1)
        wkf = jnp.concatenate(
            [dn * wk[:, h * DIM_HEAD:(h + 1) * DIM_HEAD] @ projt_p for h in range(HEADS)],
            axis=1)
        wattn = jnp.concatenate([wqf, wkf, wv, dn * wq, dn * wk], axis=1)   # [D, 704]
        wattn_l.append(wattn)
        battn_l.append(jnp.zeros((1, wattn.shape[1]), jnp.float32))  # qkv biases are zero
        wo_l.append(wo)
        bo_l.append(zeros_d)
        w1_l.append(nrm(lk[5], (DIM, DIM * FF_MULT)))
        b1_l.append(jnp.zeros((1, DIM * FF_MULT), jnp.float32))
        w2_l.append(nrm(lk[6], (DIM * FF_MULT, DIM)))
        b2_l.append(zeros_d)
        ln1g_l.append(ones_d); ln1b_l.append(zeros_d)
        ln2g_l.append(ones_d); ln2b_l.append(zeros_d)

    bf16 = jnp.bfloat16
    params.update({
        # MXU weights stored bf16 (accumulation stays f32 in-kernel); biases/LN stay f32.
        "wattn": jnp.stack(wattn_l).astype(bf16), "battn": jnp.stack(battn_l),
        "wo": jnp.stack(wo_l).astype(bf16), "bo": jnp.stack(bo_l),
        "w1": jnp.stack(w1_l).astype(bf16), "b1": jnp.stack(b1_l),
        "w2": jnp.stack(w2_l).astype(bf16), "b2": jnp.stack(b2_l),
        "ln1_g": jnp.stack(ln1g_l), "ln1_b": jnp.stack(ln1b_l),
        "ln2_g": jnp.stack(ln2g_l), "ln2_b": jnp.stack(ln2b_l),
    })
    return params


if __name__ == "__main__":
    key = jax.random.PRNGKey(0)
    pkey, xkey = jax.random.split(key)
    params = init_params(pkey)

    # classification ("else") branch: integer tokens of shape [B, n_vec, 1]
    x_tokens = jax.random.randint(xkey, (2, N_VEC, 1), 0, VOCAB, dtype=jnp.int32)

    fwd = jax.jit(performer_head_forward, static_argnames=("problem",))
    logits = fwd(params, x_tokens, problem="classification")
    logits = jax.block_until_ready(logits)
    assert logits.shape == (2, N_CLASS)
    assert bool(jnp.all(jnp.isfinite(logits)))
    print("KERNEL_OK")
</pallas_src>

<mosaic_0001>
module attributes {stable_mosaic.version = 11 : i64} {
  func.func @_performer_net_kernel(%arg0: memref<16x32xf32, #tpu.memory_space<vmem>>, %arg1: memref<16x16xf32, #tpu.memory_space<vmem>>, %arg2: memref<1x128xf32, #tpu.memory_space<vmem>>, %arg3: memref<2x1x32xf32, #tpu.memory_space<vmem>>, %arg4: memref<2x1x32xf32, #tpu.memory_space<vmem>>, %arg5: memref<2x32x704xbf16, #tpu.memory_space<vmem>>, %arg6: memref<2x1x704xf32, #tpu.memory_space<vmem>>, %arg7: memref<2x64x32xbf16, #tpu.memory_space<vmem>>, %arg8: memref<2x1x32xf32, #tpu.memory_space<vmem>>, %arg9: memref<2x1x32xf32, #tpu.memory_space<vmem>>, %arg10: memref<2x1x32xf32, #tpu.memory_space<vmem>>, %arg11: memref<2x32x128xbf16, #tpu.memory_space<vmem>>, %arg12: memref<2x1x128xf32, #tpu.memory_space<vmem>>, %arg13: memref<2x128x32xbf16, #tpu.memory_space<vmem>>, %arg14: memref<2x1x32xf32, #tpu.memory_space<vmem>>, %arg15: memref<4x8x32xf32, #tpu.memory_space<vmem>>, %arg16: memref<1x4xf32, #tpu.memory_space<vmem>>, %arg17: memref<2x4xf32, #tpu.memory_space<vmem>>) attributes {dimension_semantics = [], scalar_prefetch = 0 : i64, scratch_operands = 0 : i64, tpu.core_type = #tpu.core_type<tc>} {
    %c0 = arith.constant 0 : index
    %c0_0 = arith.constant 0 : index
    %0 = vector.load %arg0[%c0, %c0_0] : memref<16x32xf32, #tpu.memory_space<vmem>>, vector<16x32xf32>
    %c0_1 = arith.constant 0 : index
    %c0_2 = arith.constant 0 : index
    %1 = vector.load %arg1[%c0_1, %c0_2] : memref<16x16xf32, #tpu.memory_space<vmem>>, vector<16x16xf32>
    %c0_3 = arith.constant 0 : index
    %c0_4 = arith.constant 0 : index
    %2 = vector.load %arg2[%c0_3, %c0_4] : memref<1x128xf32, #tpu.memory_space<vmem>>, vector<1x128xf32>
    %cst = arith.constant 1.000000e+00 : f32
    %3 = vector.broadcast %cst : f32 to vector<1x128xf32>
    %4 = arith.subf %2, %3 : vector<1x128xf32>
    %cst_5 = arith.constant 1.000000e+30 : f32
    %5 = vector.broadcast %cst_5 : f32 to vector<1x128xf32>
    %6 = arith.mulf %4, %5 : vector<1x128xf32>
    %7 = tpu.concatenate %6, %6 in 1 : vector<1x128xf32>, vector<1x128xf32> -> vector<1x256xf32>
    %cst_6 = arith.constant dense<0.000000e+00> : vector<16xf32>
    %8 = vector.multi_reduction <add>, %0, %cst_6 [1] : vector<16x32xf32> to vector<16xf32>
    %9 = vector.shape_cast %8 : vector<16xf32> to vector<16x1xf32>
    %cst_7 = arith.constant 3.200000e+01 : f32
    %10 = vector.broadcast %cst_7 : f32 to vector<16x1xf32>
    %11 = arith.divf %9, %10 : vector<16x1xf32>
    %12 = vector.broadcast %11 : vector<16x1xf32> to vector<16x32xf32>
    %13 = arith.subf %0, %12 : vector<16x32xf32>
    %14 = arith.mulf %13, %13 : vector<16x32xf32>
    %cst_8 = arith.constant dense<0.000000e+00> : vector<16xf32>
    %15 = vector.multi_reduction <add>, %14, %cst_8 [1] : vector<16x32xf32> to vector<16xf32>
    %16 = vector.shape_cast %15 : vector<16xf32> to vector<16x1xf32>
    %cst_9 = arith.constant 3.200000e+01 : f32
    %17 = vector.broadcast %cst_9 : f32 to vector<16x1xf32>
    %18 = arith.divf %16, %17 : vector<16x1xf32>
    %19 = vector.broadcast %11 : vector<16x1xf32> to vector<16x32xf32>
    %20 = arith.subf %0, %19 : vector<16x32xf32>
    %cst_10 = arith.constant 9.99999974E-6 : f32
    %21 = vector.broadcast %cst_10 : f32 to vector<16x1xf32>
    %22 = arith.addf %18, %21 : vector<16x1xf32>
    %23 = math.rsqrt %22 : vector<16x1xf32>
    %24 = vector.broadcast %23 : vector<16x1xf32> to vector<16x32xf32>
    %25 = arith.mulf %20, %24 : vector<16x32xf32>
    %c0_11 = arith.constant 0 : index
    %c0_12 = arith.constant 0 : index
    %c0_13 = arith.constant 0 : index
    %26 = vector.load %arg3[%c0_11, %c0_12, %c0_13] : memref<2x1x32xf32, #tpu.memory_space<vmem>>, vector<1x1x32xf32>
    %27 = vector.shape_cast %26 : vector<1x1x32xf32> to vector<1x32xf32>
    %28 = vector.broadcast %27 : vector<1x32xf32> to vector<16x32xf32>
    %29 = arith.mulf %25, %28 : vector<16x32xf32>
    %c0_14 = arith.constant 0 : index
    %c0_15 = arith.constant 0 : index
    %c0_16 = arith.constant 0 : index
    %30 = vector.load %arg4[%c0_14, %c0_15, %c0_16] : memref<2x1x32xf32, #tpu.memory_space<vmem>>, vector<1x1x32xf32>
    %31 = vector.shape_cast %30 : vector<1x1x32xf32> to vector<1x32xf32>
    %32 = vector.broadcast %31 : vector<1x32xf32> to vector<16x32xf32>
    %33 = arith.addf %29, %32 : vector<16x32xf32>
    %34 = arith.truncf %33 : vector<16x32xf32> to vector<16x32xbf16>
    %c0_17 = arith.constant 0 : index
    %c0_18 = arith.constant 0 : index
    %c0_19 = arith.constant 0 : index
    %35 = vector.load %arg5[%c0_17, %c0_18, %c0_19] : memref<2x32x704xbf16, #tpu.memory_space<vmem>>, vector<1x32x704xbf16>
    %36 = vector.shape_cast %35 : vector<1x32x704xbf16> to vector<32x704xbf16>
    %cst_20 = arith.constant dense<0.000000e+00> : vector<16x704xf32>
    %37 = tpu.matmul %34, %36, %cst_20 {dimension_numbers = #tpu.dot_dimension_numbers<[1], [0], [0], [1], [0, 0, 1, 1], [], []>} : vector<16x32xbf16>, vector<32x704xbf16>, vector<16x704xf32> -> vector<16x704xf32>
    %c0_21 = arith.constant 0 : index
    %c0_22 = arith.constant 0 : index
    %c0_23 = arith.constant 0 : index
    %38 = vector.load %arg6[%c0_21, %c0_22, %c0_23] : memref<2x1x704xf32, #tpu.memory_space<vmem>>, vector<1x1x704xf32>
    %39 = vector.shape_cast %38 : vector<1x1x704xf32> to vector<1x704xf32>
    %40 = vector.broadcast %39 : vector<1x704xf32> to vector<16x704xf32>
    %41 = arith.addf %37, %40 : vector<16x704xf32>
    %42 = vector.extract_strided_slice %41 {offsets = [0, 0], sizes = [16, 256], strides = [1, 1]} : vector<16x704xf32> to vector<16x256xf32>
    %43 = vector.extract_strided_slice %41 {offsets = [0, 256], sizes = [16, 256], strides = [1, 1]} : vector<16x704xf32> to vector<16x256xf32>
    %44 = vector.extract_strided_slice %41 {offsets = [0, 512], sizes = [16, 64], strides = [1, 1]} : vector<16x704xf32> to vector<16x64xf32>
    %45 = vector.extract_strided_slice %41 {offsets = [0, 576], sizes = [16, 64], strides = [1, 1]} : vector<16x704xf32> to vector<16x64xf32>
    %46 = vector.extract_strided_slice %41 {offsets = [0, 640], sizes = [16, 64], strides = [1, 1]} : vector<16x704xf32> to vector<16x64xf32>
    %47 = vector.broadcast %7 : vector<1x256xf32> to vector<16x256xf32>
    %48 = arith.addf %43, %47 : vector<16x256xf32>
    %cst_24 = arith.constant dense<0xFF800000> : vector<16xf32>
    %49 = vector.multi_reduction <maximumf>, %48, %cst_24 [1] : vector<16x256xf32> to vector<16xf32>
    %50 = vector.shape_cast %49 : vector<16xf32> to vector<16x1xf32>
    %51 = vector.extract_strided_slice %50 {offsets = [0, 0], sizes = [8, 1], strides = [1, 1]} : vector<16x1xf32> to vector<8x1xf32>
    %cst_25 = arith.constant dense<0xFF800000> : vector<1xf32>
    %52 = vector.multi_reduction <maximumf>, %51, %cst_25 [0] : vector<8x1xf32> to vector<1xf32>
    %53 = vector.shape_cast %52 : vector<1xf32> to vector<1x1xf32>
    %54 = vector.shape_cast %53 : vector<1x1xf32> to vector<1x1xf32>
    %55 = vector.broadcast %54 : vector<1x1xf32> to vector<8x1xf32>
    %56 = vector.extract_strided_slice %50 {offsets = [8, 0], sizes = [8, 1], strides = [1, 1]} : vector<16x1xf32> to vector<8x1xf32>
    %cst_26 = arith.constant dense<0xFF800000> : vector<1xf32>
    %57 = vector.multi_reduction <maximumf>, %56, %cst_26 [0] : vector<8x1xf32> to vector<1xf32>
    %58 = vector.shape_cast %57 : vector<1xf32> to vector<1x1xf32>
    %59 = vector.shape_cast %58 : vector<1x1xf32> to vector<1x1xf32>
    %60 = vector.broadcast %59 : vector<1x1xf32> to vector<8x1xf32>
    %61 = tpu.concatenate %55, %60 in 0 : vector<8x1xf32>, vector<8x1xf32> -> vector<16x1xf32>
    %c0_27 = arith.constant 0 : index
    %c0_28 = arith.constant 0 : index
    %c0_29 = arith.constant 0 : index
    %62 = vector.load %arg8[%c0_27, %c0_28, %c0_29] : memref<2x1x32xf32, #tpu.memory_space<vmem>>, vector<1x1x32xf32>
    %63 = vector.shape_cast %62 : vector<1x1x32xf32> to vector<1x32xf32>
    %64 = vector.broadcast %63 : vector<1x32xf32> to vector<16x32xf32>
    %65 = arith.addf %0, %64 : vector<16x32xf32>
    %66 = vector.extract_strided_slice %42 {offsets = [0, 0], sizes = [16, 128], strides = [1, 1]} : vector<16x256xf32> to vector<16x128xf32>
    %67 = vector.extract_strided_slice %43 {offsets = [0, 0], sizes = [16, 128], strides = [1, 1]} : vector<16x256xf32> to vector<16x128xf32>
    %68 = vector.extract_strided_slice %44 {offsets = [0, 0], sizes = [16, 32], strides = [1, 1]} : vector<16x64xf32> to vector<16x32xf32>
    %69 = vector.extract_strided_slice %45 {offsets = [0, 0], sizes = [16, 32], strides = [1, 1]} : vector<16x64xf32> to vector<16x32xf32>
    %70 = vector.extract_strided_slice %46 {offsets = [0, 0], sizes = [16, 32], strides = [1, 1]} : vector<16x64xf32> to vector<16x32xf32>
    %71 = arith.mulf %69, %69 : vector<16x32xf32>
    %cst_30 = arith.constant dense<0.000000e+00> : vector<16xf32>
    %72 = vector.multi_reduction <add>, %71, %cst_30 [1] : vector<16x32xf32> to vector<16xf32>
    %73 = vector.shape_cast %72 : vector<16xf32> to vector<16x1xf32>
    %cst_31 = arith.constant 5.000000e-01 : f32
    %74 = vector.broadcast %cst_31 : f32 to vector<16x1xf32>
    %75 = arith.mulf %74, %73 : vector<16x1xf32>
    %76 = arith.mulf %70, %70 : vector<16x32xf32>
    %cst_32 = arith.constant dense<0.000000e+00> : vector<16xf32>
    %77 = vector.multi_reduction <add>, %76, %cst_32 [1] : vector<16x32xf32> to vector<16xf32>
    %78 = vector.shape_cast %77 : vector<16xf32> to vector<16x1xf32>
    %cst_33 = arith.constant 5.000000e-01 : f32
    %79 = vector.broadcast %cst_33 : f32 to vector<16x1xf32>
    %80 = arith.mulf %79, %78 : vector<16x1xf32>
    %81 = vector.broadcast %6 : vector<1x128xf32> to vector<16x128xf32>
    %82 = arith.addf %66, %81 : vector<16x128xf32>
    %cst_34 = arith.constant dense<0xFF800000> : vector<16xf32>
    %83 = vector.multi_reduction <maximumf>, %82, %cst_34 [1] : vector<16x128xf32> to vector<16xf32>
    %84 = vector.shape_cast %83 : vector<16xf32> to vector<16x1xf32>
    %85 = vector.broadcast %75 : vector<16x1xf32> to vector<16x128xf32>
    %86 = arith.subf %66, %85 : vector<16x128xf32>
    %87 = vector.broadcast %84 : vector<16x1xf32> to vector<16x128xf32>
    %88 = arith.subf %86, %87 : vector<16x128xf32>
    %89 = vector.broadcast %6 : vector<1x128xf32> to vector<16x128xf32>
    %90 = arith.addf %88, %89 : vector<16x128xf32>
    %91 = math.exp %90 : vector<16x128xf32>
    %cst_35 = arith.constant 9.99999974E-5 : f32
    %92 = vector.broadcast %cst_35 : f32 to vector<16x128xf32>
    %93 = arith.addf %91, %92 : vector<16x128xf32>
    %cst_36 = arith.constant 0.0953462571 : f32
    %94 = vector.broadcast %cst_36 : f32 to vector<16x128xf32>
    %95 = arith.mulf %94, %93 : vector<16x128xf32>
    %96 = vector.broadcast %2 : vector<1x128xf32> to vector<16x128xf32>
    %97 = arith.mulf %95, %96 : vector<16x128xf32>
    %98 = vector.broadcast %80 : vector<16x1xf32> to vector<16x128xf32>
    %99 = arith.subf %67, %98 : vector<16x128xf32>
    %100 = vector.broadcast %61 : vector<16x1xf32> to vector<16x128xf32>
    %101 = arith.subf %99, %100 : vector<16x128xf32>
    %102 = vector.broadcast %6 : vector<1x128xf32> to vector<16x128xf32>
    %103 = arith.addf %101, %102 : vector<16x128xf32>
    %104 = math.exp %103 : vector<16x128xf32>
    %cst_37 = arith.constant 9.99999974E-5 : f32
    %105 = vector.broadcast %cst_37 : f32 to vector<16x128xf32>
    %106 = arith.addf %104, %105 : vector<16x128xf32>
    %cst_38 = arith.constant 0.0953462571 : f32
    %107 = vector.broadcast %cst_38 : f32 to vector<16x128xf32>
    %108 = arith.mulf %107, %106 : vector<16x128xf32>
    %109 = vector.broadcast %2 : vector<1x128xf32> to vector<16x128xf32>
    %110 = arith.mulf %108, %109 : vector<16x128xf32>
    %111 = arith.truncf %97 : vector<16x128xf32> to vector<16x128xbf16>
    %112 = arith.truncf %110 : vector<16x128xf32> to vector<16x128xbf16>
    %cst_39 = arith.constant dense<0.000000e+00> : vector<16x16xf32>
    %113 = tpu.matmul %111, %112, %cst_39 {dimension_numbers = #tpu.dot_dimension_numbers<[1], [1], [0], [0], [0, 0, 1, 0], [], []>} : vector<16x128xbf16>, vector<16x128xbf16>, vector<16x16xf32> -> vector<16x16xf32>
    %114 = arith.mulf %113, %1 : vector<16x16xf32>
    %115 = arith.truncf %114 : vector<16x16xf32> to vector<16x16xbf16>
    %116 = arith.truncf %68 : vector<16x32xf32> to vector<16x32xbf16>
    %cst_40 = arith.constant dense<0.000000e+00> : vector<16x32xf32>
    %117 = tpu.matmul %115, %116, %cst_40 {dimension_numbers = #tpu.dot_dimension_numbers<[1], [0], [0], [1], [0, 0, 1, 1], [], []>} : vector<16x16xbf16>, vector<16x32xbf16>, vector<16x32xf32> -> vector<16x32xf32>
    %cst_41 = arith.constant dense<0.000000e+00> : vector<16xf32>
    %118 = vector.multi_reduction <add>, %114, %cst_41 [1] : vector<16x16xf32> to vector<16xf32>
    %119 = vector.shape_cast %118 : vector<16xf32> to vector<16x1xf32>
    %cst_42 = arith.constant dense<0.000000e+00> : vector<16xf32>
    %120 = vector.multi_reduction <add>, %97, %cst_42 [1] : vector<16x128xf32> to vector<16xf32>
    %121 = vector.shape_cast %120 : vector<16xf32> to vector<16x1xf32>
    %cst_43 = arith.constant 9.99999997E-7 : f32
    %122 = vector.broadcast %cst_43 : f32 to vector<16x1xf32>
    %123 = arith.mulf %122, %121 : vector<16x1xf32>
    %124 = arith.addf %119, %123 : vector<16x1xf32>
    %125 = tpu.reciprocal %124 {approx = true} : vector<16x1xf32> -> vector<16x1xf32>
    %126 = vector.broadcast %125 : vector<16x1xf32> to vector<16x32xf32>
    %127 = arith.mulf %117, %126 : vector<16x32xf32>
    %128 = vector.extract_strided_slice %42 {offsets = [0, 128], sizes = [16, 128], strides = [1, 1]} : vector<16x256xf32> to vector<16x128xf32>
    %129 = vector.extract_strided_slice %43 {offsets = [0, 128], sizes = [16, 128], strides = [1, 1]} : vector<16x256xf32> to vector<16x128xf32>
    %130 = vector.extract_strided_slice %44 {offsets = [0, 32], sizes = [16, 32], strides = [1, 1]} : vector<16x64xf32> to vector<16x32xf32>
    %131 = vector.extract_strided_slice %45 {offsets = [0, 32], sizes = [16, 32], strides = [1, 1]} : vector<16x64xf32> to vector<16x32xf32>
    %132 = vector.extract_strided_slice %46 {offsets = [0, 32], sizes = [16, 32], strides = [1, 1]} : vector<16x64xf32> to vector<16x32xf32>
    %133 = arith.mulf %131, %131 : vector<16x32xf32>
    %cst_44 = arith.constant dense<0.000000e+00> : vector<16xf32>
    %134 = vector.multi_reduction <add>, %133, %cst_44 [1] : vector<16x32xf32> to vector<16xf32>
    %135 = vector.shape_cast %134 : vector<16xf32> to vector<16x1xf32>
    %cst_45 = arith.constant 5.000000e-01 : f32
    %136 = vector.broadcast %cst_45 : f32 to vector<16x1xf32>
    %137 = arith.mulf %136, %135 : vector<16x1xf32>
    %138 = arith.mulf %132, %132 : vector<16x32xf32>
    %cst_46 = arith.constant dense<0.000000e+00> : vector<16xf32>
    %139 = vector.multi_reduction <add>, %138, %cst_46 [1] : vector<16x32xf32> to vector<16xf32>
    %140 = vector.shape_cast %139 : vector<16xf32> to vector<16x1xf32>
    %cst_47 = arith.constant 5.000000e-01 : f32
    %141 = vector.broadcast %cst_47 : f32 to vector<16x1xf32>
    %142 = arith.mulf %141, %140 : vector<16x1xf32>
    %143 = vector.broadcast %6 : vector<1x128xf32> to vector<16x128xf32>
    %144 = arith.addf %128, %143 : vector<16x128xf32>
    %cst_48 = arith.constant dense<0xFF800000> : vector<16xf32>
    %145 = vector.multi_reduction <maximumf>, %144, %cst_48 [1] : vector<16x128xf32> to vector<16xf32>
    %146 = vector.shape_cast %145 : vector<16xf32> to vector<16x1xf32>
    %147 = vector.broadcast %137 : vector<16x1xf32> to vector<16x128xf32>
    %148 = arith.subf %128, %147 : vector<16x128xf32>
    %149 = vector.broadcast %146 : vector<16x1xf32> to vector<16x128xf32>
    %150 = arith.subf %148, %149 : vector<16x128xf32>
    %151 = vector.broadcast %6 : vector<1x128xf32> to vector<16x128xf32>
    %152 = arith.addf %150, %151 : vector<16x128xf32>
    %153 = math.exp %152 : vector<16x128xf32>
    %cst_49 = arith.constant 9.99999974E-5 : f32
    %154 = vector.broadcast %cst_49 : f32 to vector<16x128xf32>
    %155 = arith.addf %153, %154 : vector<16x128xf32>
    %cst_50 = arith.constant 0.0953462571 : f32
    %156 = vector.broadcast %cst_50 : f32 to vector<16x128xf32>
    %157 = arith.mulf %156, %155 : vector<16x128xf32>
    %158 = vector.broadcast %2 : vector<1x128xf32> to vector<16x128xf32>
    %159 = arith.mulf %157, %158 : vector<16x128xf32>
    %160 = vector.broadcast %142 : vector<16x1xf32> to vector<16x128xf32>
    %161 = arith.subf %129, %160 : vector<16x128xf32>
    %162 = vector.broadcast %61 : vector<16x1xf32> to vector<16x128xf32>
    %163 = arith.subf %161, %162 : vector<16x128xf32>
    %164 = vector.broadcast %6 : vector<1x128xf32> to vector<16x128xf32>
    %165 = arith.addf %163, %164 : vector<16x128xf32>
    %166 = math.exp %165 : vector<16x128xf32>
    %cst_51 = arith.constant 9.99999974E-5 : f32
    %167 = vector.broadcast %cst_51 : f32 to vector<16x128xf32>
    %168 = arith.addf %166, %167 : vector<16x128xf32>
    %cst_52 = arith.constant 0.0953462571 : f32
    %169 = vector.broadcast %cst_52 : f32 to vector<16x128xf32>
    %170 = arith.mulf %169, %168 : vector<16x128xf32>
    %171 = vector.broadcast %2 : vector<1x128xf32> to vector<16x128xf32>
    %172 = arith.mulf %170, %171 : vector<16x128xf32>
    %173 = arith.truncf %159 : vector<16x128xf32> to vector<16x128xbf16>
    %174 = arith.truncf %172 : vector<16x128xf32> to vector<16x128xbf16>
    %cst_53 = arith.constant dense<0.000000e+00> : vector<16x16xf32>
    %175 = tpu.matmul %173, %174, %cst_53 {dimension_numbers = #tpu.dot_dimension_numbers<[1], [1], [0], [0], [0, 0, 1, 0], [], []>} : vector<16x128xbf16>, vector<16x128xbf16>, vector<16x16xf32> -> vector<16x16xf32>
    %176 = arith.mulf %175, %1 : vector<16x16xf32>
    %177 = arith.truncf %176 : vector<16x16xf32> to vector<16x16xbf16>
    %178 = arith.truncf %130 : vector<16x32xf32> to vector<16x32xbf16>
    %cst_54 = arith.constant dense<0.000000e+00> : vector<16x32xf32>
    %179 = tpu.matmul %177, %178, %cst_54 {dimension_numbers = #tpu.dot_dimension_numbers<[1], [0], [0], [1], [0, 0, 1, 1], [], []>} : vector<16x16xbf16>, vector<16x32xbf16>, vector<16x32xf32> -> vector<16x32xf32>
    %cst_55 = arith.constant dense<0.000000e+00> : vector<16xf32>
    %180 = vector.multi_reduction <add>, %176, %cst_55 [1] : vector<16x16xf32> to vector<16xf32>
    %181 = vector.shape_cast %180 : vector<16xf32> to vector<16x1xf32>
    %cst_56 = arith.constant dense<0.000000e+00> : vector<16xf32>
    %182 = vector.multi_reduction <add>, %159, %cst_56 [1] : vector<16x128xf32> to vector<16xf32>
    %183 = vector.shape_cast %182 : vector<16xf32> to vector<16x1xf32>
    %cst_57 = arith.constant 9.99999997E-7 : f32
    %184 = vector.broadcast %cst_57 : f32 to vector<16x1xf32>
    %185 = arith.mulf %184, %183 : vector<16x1xf32>
    %186 = arith.addf %181, %185 : vector<16x1xf32>
    %187 = tpu.reciprocal %186 {approx = true} : vector<16x1xf32> -> vector<16x1xf32>
    %188 = vector.broadcast %187 : vector<16x1xf32> to vector<16x32xf32>
    %189 = arith.mulf %179, %188 : vector<16x32xf32>
    %190 = tpu.concatenate %127, %189 in 1 : vector<16x32xf32>, vector<16x32xf32> -> vector<16x64xf32>
    %191 = arith.truncf %190 : vector<16x64xf32> to vector<16x64xbf16>
    %c0_58 = arith.constant 0 : index
    %c0_59 = arith.constant 0 : index
    %c0_60 = arith.constant 0 : index
    %192 = vector.load %arg7[%c0_58, %c0_59, %c0_60] : memref<2x64x32xbf16, #tpu.memory_space<vmem>>, vector<1x64x32xbf16>
    %193 = vector.shape_cast %192 : vector<1x64x32xbf16> to vector<64x32xbf16>
    %cst_61 = arith.constant dense<0.000000e+00> : vector<16x32xf32>
    %194 = tpu.matmul %191, %193, %cst_61 {dimension_numbers = #tpu.dot_dimension_numbers<[1], [0], [0], [1], [0, 0, 1, 1], [], []>} : vector<16x64xbf16>, vector<64x32xbf16>, vector<16x32xf32> -> vector<16x32xf32>
    %195 = arith.addf %65, %194 : vector<16x32xf32>
    %cst_62 = arith.constant dense<0.000000e+00> : vector<16xf32>
    %196 = vector.multi_reduction <add>, %195, %cst_62 [1] : vector<16x32xf32> to vector<16xf32>
    %197 = vector.shape_cast %196 : vector<16xf32> to vector<16x1xf32>
    %cst_63 = arith.constant 3.200000e+01 : f32
    %198 = vector.broadcast %cst_63 : f32 to vector<16x1xf32>
    %199 = arith.divf %197, %198 : vector<16x1xf32>
    %200 = vector.broadcast %199 : vector<16x1xf32> to vector<16x32xf32>
    %201 = arith.subf %195, %200 : vector<16x32xf32>
    %202 = arith.mulf %201, %201 : vector<16x32xf32>
    %cst_64 = arith.constant dense<0.000000e+00> : vector<16xf32>
    %203 = vector.multi_reduction <add>, %202, %cst_64 [1] : vector<16x32xf32> to vector<16xf32>
    %204 = vector.shape_cast %203 : vector<16xf32> to vector<16x1xf32>
    %cst_65 = arith.constant 3.200000e+01 : f32
    %205 = vector.broadcast %cst_65 : f32 to vector<16x1xf32>
    %206 = arith.divf %204, %205 : vector<16x1xf32>
    %207 = vector.broadcast %199 : vector<16x1xf32> to vector<16x32xf32>
    %208 = arith.subf %195, %207 : vector<16x32xf32>
    %cst_66 = arith.constant 9.99999974E-6 : f32
    %209 = vector.broadcast %cst_66 : f32 to vector<16x1xf32>
    %210 = arith.addf %206, %209 : vector<16x1xf32>
    %211 = math.rsqrt %210 : vector<16x1xf32>
    %212 = vector.broadcast %211 : vector<16x1xf32> to vector<16x32xf32>
    %213 = arith.mulf %208, %212 : vector<16x32xf32>
    %c0_67 = arith.constant 0 : index
    %c0_68 = arith.constant 0 : index
    %c0_69 = arith.constant 0 : index
    %214 = vector.load %arg9[%c0_67, %c0_68, %c0_69] : memref<2x1x32xf32, #tpu.memory_space<vmem>>, vector<1x1x32xf32>
    %215 = vector.shape_cast %214 : vector<1x1x32xf32> to vector<1x32xf32>
    %216 = vector.broadcast %215 : vector<1x32xf32> to vector<16x32xf32>
    %217 = arith.mulf %213, %216 : vector<16x32xf32>
    %c0_70 = arith.constant 0 : index
    %c0_71 = arith.constant 0 : index
    %c0_72 = arith.constant 0 : index
    %218 = vector.load %arg10[%c0_70, %c0_71, %c0_72] : memref<2x1x32xf32, #tpu.memory_space<vmem>>, vector<1x1x32xf32>
    %219 = vector.shape_cast %218 : vector<1x1x32xf32> to vector<1x32xf32>
    %220 = vector.broadcast %219 : vector<1x32xf32> to vector<16x32xf32>
    %221 = arith.addf %217, %220 : vector<16x32xf32>
    %222 = arith.truncf %221 : vector<16x32xf32> to vector<16x32xbf16>
    %c0_73 = arith.constant 0 : index
    %c0_74 = arith.constant 0 : index
    %c0_75 = arith.constant 0 : index
    %223 = vector.load %arg11[%c0_73, %c0_74, %c0_75] : memref<2x32x128xbf16, #tpu.memory_space<vmem>>, vector<1x32x128xbf16>
    %224 = vector.shape_cast %223 : vector<1x32x128xbf16> to vector<32x128xbf16>
    %cst_76 = arith.constant dense<0.000000e+00> : vector<16x128xf32>
    %225 = tpu.matmul %222, %224, %cst_76 {dimension_numbers = #tpu.dot_dimension_numbers<[1], [0], [0], [1], [0, 0, 1, 1], [], []>} : vector<16x32xbf16>, vector<32x128xbf16>, vector<16x128xf32> -> vector<16x128xf32>
    %c0_77 = arith.constant 0 : index
    %c0_78 = arith.constant 0 : index
    %c0_79 = arith.constant 0 : index
    %226 = vector.load %arg12[%c0_77, %c0_78, %c0_79] : memref<2x1x128xf32, #tpu.memory_space<vmem>>, vector<1x1x128xf32>
    %227 = vector.shape_cast %226 : vector<1x1x128xf32> to vector<1x128xf32>
    %228 = vector.broadcast %227 : vector<1x128xf32> to vector<16x128xf32>
    %229 = arith.addf %225, %228 : vector<16x128xf32>
    %cst_80 = arith.constant 5.000000e-01 : f32
    %230 = vector.broadcast %cst_80 : f32 to vector<16x128xf32>
    %231 = arith.mulf %230, %229 : vector<16x128xf32>
    %cst_81 = arith.constant 4.471500e-02 : f32
    %232 = vector.broadcast %cst_81 : f32 to vector<16x128xf32>
    %233 = arith.mulf %232, %229 : vector<16x128xf32>
    %234 = arith.mulf %233, %229 : vector<16x128xf32>
    %235 = arith.mulf %234, %229 : vector<16x128xf32>
    %236 = arith.addf %229, %235 : vector<16x128xf32>
    %cst_82 = arith.constant 0.797884583 : f32
    %237 = vector.broadcast %cst_82 : f32 to vector<16x128xf32>
    %238 = arith.mulf %237, %236 : vector<16x128xf32>
    %239 = math.tanh %238 : vector<16x128xf32>
    %cst_83 = arith.constant 1.000000e+00 : f32
    %240 = vector.broadcast %cst_83 : f32 to vector<16x128xf32>
    %241 = arith.addf %240, %239 : vector<16x128xf32>
    %242 = arith.mulf %231, %241 : vector<16x128xf32>
    %243 = arith.truncf %242 : vector<16x128xf32> to vector<16x128xbf16>
    %c0_84 = arith.constant 0 : index
    %c0_85 = arith.constant 0 : index
    %c0_86 = arith.constant 0 : index
    %244 = vector.load %arg13[%c0_84, %c0_85, %c0_86] : memref<2x128x32xbf16, #tpu.memory_space<vmem>>, vector<1x128x32xbf16>
    %245 = vector.shape_cast %244 : vector<1x128x32xbf16> to vector<128x32xbf16>
    %cst_87 = arith.constant dense<0.000000e+00> : vector<16x32xf32>
    %246 = tpu.matmul %243, %245, %cst_87 {dimension_numbers = #tpu.dot_dimension_numbers<[1], [0], [0], [1], [0, 0, 1, 1], [], []>} : vector<16x128xbf16>, vector<128x32xbf16>, vector<16x32xf32> -> vector<16x32xf32>
    %247 = arith.addf %195, %246 : vector<16x32xf32>
    %c0_88 = arith.constant 0 : index
    %c0_89 = arith.constant 0 : index
    %c0_90 = arith.constant 0 : index
    %248 = vector.load %arg14[%c0_88, %c0_89, %c0_90] : memref<2x1x32xf32, #tpu.memory_space<vmem>>, vector<1x1x32xf32>
    %249 = vector.shape_cast %248 : vector<1x1x32xf32> to vector<1x32xf32>
    %250 = vector.broadcast %249 : vector<1x32xf32> to vector<16x32xf32>
    %251 = arith.addf %247, %250 : vector<16x32xf32>
    %cst_91 = arith.constant dense<0.000000e+00> : vector<16xf32>
    %252 = vector.multi_reduction <add>, %251, %cst_91 [1] : vector<16x32xf32> to vector<16xf32>
    %253 = vector.shape_cast %252 : vector<16xf32> to vector<16x1xf32>
    %cst_92 = arith.constant 3.200000e+01 : f32
    %254 = vector.broadcast %cst_92 : f32 to vector<16x1xf32>
    %255 = arith.divf %253, %254 : vector<16x1xf32>
    %256 = vector.broadcast %255 : vector<16x1xf32> to vector<16x32xf32>
    %257 = arith.subf %251, %256 : vector<16x32xf32>
    %258 = arith.mulf %257, %257 : vector<16x32xf32>
    %cst_93 = arith.constant dense<0.000000e+00> : vector<16xf32>
    %259 = vector.multi_reduction <add>, %258, %cst_93 [1] : vector<16x32xf32> to vector<16xf32>
    %260 = vector.shape_cast %259 : vector<16xf32> to vector<16x1xf32>
    %cst_94 = arith.constant 3.200000e+01 : f32
    %261 = vector.broadcast %cst_94 : f32 to vector<16x1xf32>
    %262 = arith.divf %260, %261 : vector<16x1xf32>
    %263 = vector.broadcast %255 : vector<16x1xf32> to vector<16x32xf32>
    %264 = arith.subf %251, %263 : vector<16x32xf32>
    %cst_95 = arith.constant 9.99999974E-6 : f32
    %265 = vector.broadcast %cst_95 : f32 to vector<16x1xf32>
    %266 = arith.addf %262, %265 : vector<16x1xf32>
    %267 = math.rsqrt %266 : vector<16x1xf32>
    %268 = vector.broadcast %267 : vector<16x1xf32> to vector<16x32xf32>
    %269 = arith.mulf %264, %268 : vector<16x32xf32>
    %c1 = arith.constant 1 : index
    %c0_96 = arith.constant 0 : index
    %c0_97 = arith.constant 0 : index
    %270 = vector.load %arg3[%c1, %c0_96, %c0_97] : memref<2x1x32xf32, #tpu.memory_space<vmem>>, vector<1x1x32xf32>
    %271 = vector.shape_cast %270 : vector<1x1x32xf32> to vector<1x32xf32>
    %272 = vector.broadcast %271 : vector<1x32xf32> to vector<16x32xf32>
    %273 = arith.mulf %269, %272 : vector<16x32xf32>
    %c1_98 = arith.constant 1 : index
    %c0_99 = arith.constant 0 : index
    %c0_100 = arith.constant 0 : index
    %274 = vector.load %arg4[%c1_98, %c0_99, %c0_100] : memref<2x1x32xf32, #tpu.memory_space<vmem>>, vector<1x1x32xf32>
    %275 = vector.shape_cast %274 : vector<1x1x32xf32> to vector<1x32xf32>
    %276 = vector.broadcast %275 : vector<1x32xf32> to vector<16x32xf32>
    %277 = arith.addf %273, %276 : vector<16x32xf32>
    %278 = arith.truncf %277 : vector<16x32xf32> to vector<16x32xbf16>
    %c1_101 = arith.constant 1 : index
    %c0_102 = arith.constant 0 : index
    %c0_103 = arith.constant 0 : index
    %279 = vector.load %arg5[%c1_101, %c0_102, %c0_103] : memref<2x32x704xbf16, #tpu.memory_space<vmem>>, vector<1x32x704xbf16>
    %280 = vector.shape_cast %279 : vector<1x32x704xbf16> to vector<32x704xbf16>
    %cst_104 = arith.constant dense<0.000000e+00> : vector<16x704xf32>
    %281 = tpu.matmul %278, %280, %cst_104 {dimension_numbers = #tpu.dot_dimension_numbers<[1], [0], [0], [1], [0, 0, 1, 1], [], []>} : vector<16x32xbf16>, vector<32x704xbf16>, vector<16x704xf32> -> vector<16x704xf32>
    %c1_105 = arith.constant 1 : index
    %c0_106 = arith.constant 0 : index
    %c0_107 = arith.constant 0 : index
    %282 = vector.load %arg6[%c1_105, %c0_106, %c0_107] : memref<2x1x704xf32, #tpu.memory_space<vmem>>, vector<1x1x704xf32>
    %283 = vector.shape_cast %282 : vector<1x1x704xf32> to vector<1x704xf32>
    %284 = vector.broadcast %283 : vector<1x704xf32> to vector<16x704xf32>
    %285 = arith.addf %281, %284 : vector<16x704xf32>
    %286 = vector.extract_strided_slice %285 {offsets = [0, 0], sizes = [16, 256], strides = [1, 1]} : vector<16x704xf32> to vector<16x256xf32>
    %287 = vector.extract_strided_slice %285 {offsets = [0, 256], sizes = [16, 256], strides = [1, 1]} : vector<16x704xf32> to vector<16x256xf32>
    %288 = vector.extract_strided_slice %285 {offsets = [0, 512], sizes = [16, 64], strides = [1, 1]} : vector<16x704xf32> to vector<16x64xf32>
    %289 = vector.extract_strided_slice %285 {offsets = [0, 576], sizes = [16, 64], strides = [1, 1]} : vector<16x704xf32> to vector<16x64xf32>
    %290 = vector.extract_strided_slice %285 {offsets = [0, 640], sizes = [16, 64], strides = [1, 1]} : vector<16x704xf32> to vector<16x64xf32>
    %291 = vector.broadcast %7 : vector<1x256xf32> to vector<16x256xf32>
    %292 = arith.addf %287, %291 : vector<16x256xf32>
    %cst_108 = arith.constant dense<0xFF800000> : vector<16xf32>
    %293 = vector.multi_reduction <maximumf>, %292, %cst_108 [1] : vector<16x256xf32> to vector<16xf32>
    %294 = vector.shape_cast %293 : vector<16xf32> to vector<16x1xf32>
    %295 = vector.extract_strided_slice %294 {offsets = [0, 0], sizes = [8, 1], strides = [1, 1]} : vector<16x1xf32> to vector<8x1xf32>
    %cst_109 = arith.constant dense<0xFF800000> : vector<1xf32>
    %296 = vector.multi_reduction <maximumf>, %295, %cst_109 [0] : vector<8x1xf32> to vector<1xf32>
    %297 = vector.shape_cast %296 : vector<1xf32> to vector<1x1xf32>
    %298 = vector.shape_cast %297 : vector<1x1xf32> to vector<1x1xf32>
    %299 = vector.broadcast %298 : vector<1x1xf32> to vector<8x1xf32>
    %300 = vector.extract_strided_slice %294 {offsets = [8, 0], sizes = [8, 1], strides = [1, 1]} : vector<16x1xf32> to vector<8x1xf32>
    %cst_110 = arith.constant dense<0xFF800000> : vector<1xf32>
    %301 = vector.multi_reduction <maximumf>, %300, %cst_110 [0] : vector<8x1xf32> to vector<1xf32>
    %302 = vector.shape_cast %301 : vector<1xf32> to vector<1x1xf32>
    %303 = vector.shape_cast %302 : vector<1x1xf32> to vector<1x1xf32>
    %304 = vector.broadcast %303 : vector<1x1xf32> to vector<8x1xf32>
    %305 = tpu.concatenate %299, %304 in 0 : vector<8x1xf32>, vector<8x1xf32> -> vector<16x1xf32>
    %c1_111 = arith.constant 1 : index
    %c0_112 = arith.constant 0 : index
    %c0_113 = arith.constant 0 : index
    %306 = vector.load %arg8[%c1_111, %c0_112, %c0_113] : memref<2x1x32xf32, #tpu.memory_space<vmem>>, vector<1x1x32xf32>
    %307 = vector.shape_cast %306 : vector<1x1x32xf32> to vector<1x32xf32>
    %308 = vector.broadcast %307 : vector<1x32xf32> to vector<16x32xf32>
    %309 = arith.addf %251, %308 : vector<16x32xf32>
    %310 = vector.extract_strided_slice %286 {offsets = [0, 0], sizes = [16, 128], strides = [1, 1]} : vector<16x256xf32> to vector<16x128xf32>
    %311 = vector.extract_strided_slice %287 {offsets = [0, 0], sizes = [16, 128], strides = [1, 1]} : vector<16x256xf32> to vector<16x128xf32>
    %312 = vector.extract_strided_slice %288 {offsets = [0, 0], sizes = [16, 32], strides = [1, 1]} : vector<16x64xf32> to vector<16x32xf32>
    %313 = vector.extract_strided_slice %289 {offsets = [0, 0], sizes = [16, 32], strides = [1, 1]} : vector<16x64xf32> to vector<16x32xf32>
    %314 = vector.extract_strided_slice %290 {offsets = [0, 0], sizes = [16, 32], strides = [1, 1]} : vector<16x64xf32> to vector<16x32xf32>
    %315 = arith.mulf %313, %313 : vector<16x32xf32>
    %cst_114 = arith.constant dense<0.000000e+00> : vector<16xf32>
    %316 = vector.multi_reduction <add>, %315, %cst_114 [1] : vector<16x32xf32> to vector<16xf32>
    %317 = vector.shape_cast %316 : vector<16xf32> to vector<16x1xf32>
    %cst_115 = arith.constant 5.000000e-01 : f32
    %318 = vector.broadcast %cst_115 : f32 to vector<16x1xf32>
    %319 = arith.mulf %318, %317 : vector<16x1xf32>
    %320 = arith.mulf %314, %314 : vector<16x32xf32>
    %cst_116 = arith.constant dense<0.000000e+00> : vector<16xf32>
    %321 = vector.multi_reduction <add>, %320, %cst_116 [1] : vector<16x32xf32> to vector<16xf32>
    %322 = vector.shape_cast %321 : vector<16xf32> to vector<16x1xf32>
    %cst_117 = arith.constant 5.000000e-01 : f32
    %323 = vector.broadcast %cst_117 : f32 to vector<16x1xf32>
    %324 = arith.mulf %323, %322 : vector<16x1xf32>
    %325 = vector.broadcast %6 : vector<1x128xf32> to vector<16x128xf32>
    %326 = arith.addf %310, %325 : vector<16x128xf32>
    %cst_118 = arith.constant dense<0xFF800000> : vector<16xf32>
    %327 = vector.multi_reduction <maximumf>, %326, %cst_118 [1] : vector<16x128xf32> to vector<16xf32>
    %328 = vector.shape_cast %327 : vector<16xf32> to vector<16x1xf32>
    %329 = vector.broadcast %319 : vector<16x1xf32> to vector<16x128xf32>
    %330 = arith.subf %310, %329 : vector<16x128xf32>
    %331 = vector.broadcast %328 : vector<16x1xf32> to vector<16x128xf32>
    %332 = arith.subf %330, %331 : vector<16x128xf32>
    %333 = vector.broadcast %6 : vector<1x128xf32> to vector<16x128xf32>
    %334 = arith.addf %332, %333 : vector<16x128xf32>
    %335 = math.exp %334 : vector<16x128xf32>
    %cst_119 = arith.constant 9.99999974E-5 : f32
    %336 = vector.broadcast %cst_119 : f32 to vector<16x128xf32>
    %337 = arith.addf %335, %336 : vector<16x128xf32>
    %cst_120 = arith.constant 0.0953462571 : f32
    %338 = vector.broadcast %cst_120 : f32 to vector<16x128xf32>
    %339 = arith.mulf %338, %337 : vector<16x128xf32>
    %340 = vector.broadcast %2 : vector<1x128xf32> to vector<16x128xf32>
    %341 = arith.mulf %339, %340 : vector<16x128xf32>
    %342 = vector.broadcast %324 : vector<16x1xf32> to vector<16x128xf32>
    %343 = arith.subf %311, %342 : vector<16x128xf32>
    %344 = vector.broadcast %305 : vector<16x1xf32> to vector<16x128xf32>
    %345 = arith.subf %343, %344 : vector<16x128xf32>
    %346 = vector.broadcast %6 : vector<1x128xf32> to vector<16x128xf32>
    %347 = arith.addf %345, %346 : vector<16x128xf32>
    %348 = math.exp %347 : vector<16x128xf32>
    %cst_121 = arith.constant 9.99999974E-5 : f32
    %349 = vector.broadcast %cst_121 : f32 to vector<16x128xf32>
    %350 = arith.addf %348, %349 : vector<16x128xf32>
    %cst_122 = arith.constant 0.0953462571 : f32
    %351 = vector.broadcast %cst_122 : f32 to vector<16x128xf32>
    %352 = arith.mulf %351, %350 : vector<16x128xf32>
    %353 = vector.broadcast %2 : vector<1x128xf32> to vector<16x128xf32>
    %354 = arith.mulf %352, %353 : vector<16x128xf32>
    %355 = arith.truncf %341 : vector<16x128xf32> to vector<16x128xbf16>
    %356 = arith.truncf %354 : vector<16x128xf32> to vector<16x128xbf16>
    %cst_123 = arith.constant dense<0.000000e+00> : vector<16x16xf32>
    %357 = tpu.matmul %355, %356, %cst_123 {dimension_numbers = #tpu.dot_dimension_numbers<[1], [1], [0], [0], [0, 0, 1, 0], [], []>} : vector<16x128xbf16>, vector<16x128xbf16>, vector<16x16xf32> -> vector<16x16xf32>
    %358 = arith.mulf %357, %1 : vector<16x16xf32>
    %359 = arith.truncf %358 : vector<16x16xf32> to vector<16x16xbf16>
    %360 = arith.truncf %312 : vector<16x32xf32> to vector<16x32xbf16>
    %cst_124 = arith.constant dense<0.000000e+00> : vector<16x32xf32>
    %361 = tpu.matmul %359, %360, %cst_124 {dimension_numbers = #tpu.dot_dimension_numbers<[1], [0], [0], [1], [0, 0, 1, 1], [], []>} : vector<16x16xbf16>, vector<16x32xbf16>, vector<16x32xf32> -> vector<16x32xf32>
    %cst_125 = arith.constant dense<0.000000e+00> : vector<16xf32>
    %362 = vector.multi_reduction <add>, %358, %cst_125 [1] : vector<16x16xf32> to vector<16xf32>
    %363 = vector.shape_cast %362 : vector<16xf32> to vector<16x1xf32>
    %cst_126 = arith.constant dense<0.000000e+00> : vector<16xf32>
    %364 = vector.multi_reduction <add>, %341, %cst_126 [1] : vector<16x128xf32> to vector<16xf32>
    %365 = vector.shape_cast %364 : vector<16xf32> to vector<16x1xf32>
    %cst_127 = arith.constant 9.99999997E-7 : f32
    %366 = vector.broadcast %cst_127 : f32 to vector<16x1xf32>
    %367 = arith.mulf %366, %365 : vector<16x1xf32>
    %368 = arith.addf %363, %367 : vector<16x1xf32>
    %369 = tpu.reciprocal %368 {approx = true} : vector<16x1xf32> -> vector<16x1xf32>
    %370 = vector.broadcast %369 : vector<16x1xf32> to vector<16x32xf32>
    %371 = arith.mulf %361, %370 : vector<16x32xf32>
    %372 = vector.extract_strided_slice %286 {offsets = [0, 128], sizes = [16, 128], strides = [1, 1]} : vector<16x256xf32> to vector<16x128xf32>
    %373 = vector.extract_strided_slice %287 {offsets = [0, 128], sizes = [16, 128], strides = [1, 1]} : vector<16x256xf32> to vector<16x128xf32>
    %374 = vector.extract_strided_slice %288 {offsets = [0, 32], sizes = [16, 32], strides = [1, 1]} : vector<16x64xf32> to vector<16x32xf32>
    %375 = vector.extract_strided_slice %289 {offsets = [0, 32], sizes = [16, 32], strides = [1, 1]} : vector<16x64xf32> to vector<16x32xf32>
    %376 = vector.extract_strided_slice %290 {offsets = [0, 32], sizes = [16, 32], strides = [1, 1]} : vector<16x64xf32> to vector<16x32xf32>
    %377 = arith.mulf %375, %375 : vector<16x32xf32>
    %cst_128 = arith.constant dense<0.000000e+00> : vector<16xf32>
    %378 = vector.multi_reduction <add>, %377, %cst_128 [1] : vector<16x32xf32> to vector<16xf32>
    %379 = vector.shape_cast %378 : vector<16xf32> to vector<16x1xf32>
    %cst_129 = arith.constant 5.000000e-01 : f32
    %380 = vector.broadcast %cst_129 : f32 to vector<16x1xf32>
    %381 = arith.mulf %380, %379 : vector<16x1xf32>
    %382 = arith.mulf %376, %376 : vector<16x32xf32>
    %cst_130 = arith.constant dense<0.000000e+00> : vector<16xf32>
    %383 = vector.multi_reduction <add>, %382, %cst_130 [1] : vector<16x32xf32> to vector<16xf32>
    %384 = vector.shape_cast %383 : vector<16xf32> to vector<16x1xf32>
    %cst_131 = arith.constant 5.000000e-01 : f32
    %385 = vector.broadcast %cst_131 : f32 to vector<16x1xf32>
    %386 = arith.mulf %385, %384 : vector<16x1xf32>
    %387 = vector.broadcast %6 : vector<1x128xf32> to vector<16x128xf32>
    %388 = arith.addf %372, %387 : vector<16x128xf32>
    %cst_132 = arith.constant dense<0xFF800000> : vector<16xf32>
    %389 = vector.multi_reduction <maximumf>, %388, %cst_132 [1] : vector<16x128xf32> to vector<16xf32>
    %390 = vector.shape_cast %389 : vector<16xf32> to vector<16x1xf32>
    %391 = vector.broadcast %381 : vector<16x1xf32> to vector<16x128xf32>
    %392 = arith.subf %372, %391 : vector<16x128xf32>
    %393 = vector.broadcast %390 : vector<16x1xf32> to vector<16x128xf32>
    %394 = arith.subf %392, %393 : vector<16x128xf32>
    %395 = vector.broadcast %6 : vector<1x128xf32> to vector<16x128xf32>
    %396 = arith.addf %394, %395 : vector<16x128xf32>
    %397 = math.exp %396 : vector<16x128xf32>
    %cst_133 = arith.constant 9.99999974E-5 : f32
    %398 = vector.broadcast %cst_133 : f32 to vector<16x128xf32>
    %399 = arith.addf %397, %398 : vector<16x128xf32>
    %cst_134 = arith.constant 0.0953462571 : f32
    %400 = vector.broadcast %cst_134 : f32 to vector<16x128xf32>
    %401 = arith.mulf %400, %399 : vector<16x128xf32>
    %402 = vector.broadcast %2 : vector<1x128xf32> to vector<16x128xf32>
    %403 = arith.mulf %401, %402 : vector<16x128xf32>
    %404 = vector.broadcast %386 : vector<16x1xf32> to vector<16x128xf32>
    %405 = arith.subf %373, %404 : vector<16x128xf32>
    %406 = vector.broadcast %305 : vector<16x1xf32> to vector<16x128xf32>
    %407 = arith.subf %405, %406 : vector<16x128xf32>
    %408 = vector.broadcast %6 : vector<1x128xf32> to vector<16x128xf32>
    %409 = arith.addf %407, %408 : vector<16x128xf32>
    %410 = math.exp %409 : vector<16x128xf32>
    %cst_135 = arith.constant 9.99999974E-5 : f32
    %411 = vector.broadcast %cst_135 : f32 to vector<16x128xf32>
    %412 = arith.addf %410, %411 : vector<16x128xf32>
    %cst_136 = arith.constant 0.0953462571 : f32
    %413 = vector.broadcast %cst_136 : f32 to vector<16x128xf32>
    %414 = arith.mulf %413, %412 : vector<16x128xf32>
    %415 = vector.broadcast %2 : vector<1x128xf32> to vector<16x128xf32>
    %416 = arith.mulf %414, %415 : vector<16x128xf32>
    %417 = arith.truncf %403 : vector<16x128xf32> to vector<16x128xbf16>
    %418 = arith.truncf %416 : vector<16x128xf32> to vector<16x128xbf16>
    %cst_137 = arith.constant dense<0.000000e+00> : vector<16x16xf32>
    %419 = tpu.matmul %417, %418, %cst_137 {dimension_numbers = #tpu.dot_dimension_numbers<[1], [1], [0], [0], [0, 0, 1, 0], [], []>} : vector<16x128xbf16>, vector<16x128xbf16>, vector<16x16xf32> -> vector<16x16xf32>
    %420 = arith.mulf %419, %1 : vector<16x16xf32>
    %421 = arith.truncf %420 : vector<16x16xf32> to vector<16x16xbf16>
    %422 = arith.truncf %374 : vector<16x32xf32> to vector<16x32xbf16>
    %cst_138 = arith.constant dense<0.000000e+00> : vector<16x32xf32>
    %423 = tpu.matmul %421, %422, %cst_138 {dimension_numbers = #tpu.dot_dimension_numbers<[1], [0], [0], [1], [0, 0, 1, 1], [], []>} : vector<16x16xbf16>, vector<16x32xbf16>, vector<16x32xf32> -> vector<16x32xf32>
    %cst_139 = arith.constant dense<0.000000e+00> : vector<16xf32>
    %424 = vector.multi_reduction <add>, %420, %cst_139 [1] : vector<16x16xf32> to vector<16xf32>
    %425 = vector.shape_cast %424 : vector<16xf32> to vector<16x1xf32>
    %cst_140 = arith.constant dense<0.000000e+00> : vector<16xf32>
    %426 = vector.multi_reduction <add>, %403, %cst_140 [1] : vector<16x128xf32> to vector<16xf32>
    %427 = vector.shape_cast %426 : vector<16xf32> to vector<16x1xf32>
    %cst_141 = arith.constant 9.99999997E-7 : f32
    %428 = vector.broadcast %cst_141 : f32 to vector<16x1xf32>
    %429 = arith.mulf %428, %427 : vector<16x1xf32>
    %430 = arith.addf %425, %429 : vector<16x1xf32>
    %431 = tpu.reciprocal %430 {approx = true} : vector<16x1xf32> -> vector<16x1xf32>
    %432 = vector.broadcast %431 : vector<16x1xf32> to vector<16x32xf32>
    %433 = arith.mulf %423, %432 : vector<16x32xf32>
    %434 = tpu.concatenate %371, %433 in 1 : vector<16x32xf32>, vector<16x32xf32> -> vector<16x64xf32>
    %435 = arith.truncf %434 : vector<16x64xf32> to vector<16x64xbf16>
    %c1_142 = arith.constant 1 : index
    %c0_143 = arith.constant 0 : index
    %c0_144 = arith.constant 0 : index
    %436 = vector.load %arg7[%c1_142, %c0_143, %c0_144] : memref<2x64x32xbf16, #tpu.memory_space<vmem>>, vector<1x64x32xbf16>
    %437 = vector.shape_cast %436 : vector<1x64x32xbf16> to vector<64x32xbf16>
    %cst_145 = arith.constant dense<0.000000e+00> : vector<16x32xf32>
    %438 = tpu.matmul %435, %437, %cst_145 {dimension_numbers = #tpu.dot_dimension_numbers<[1], [0], [0], [1], [0, 0, 1, 1], [], []>} : vector<16x64xbf16>, vector<64x32xbf16>, vector<16x32xf32> -> vector<16x32xf32>
    %439 = arith.addf %309, %438 : vector<16x32xf32>
    %cst_146 = arith.constant dense<0.000000e+00> : vector<16xf32>
    %440 = vector.multi_reduction <add>, %439, %cst_146 [1] : vector<16x32xf32> to vector<16xf32>
    %441 = vector.shape_cast %440 : vector<16xf32> to vector<16x1xf32>
    %cst_147 = arith.constant 3.200000e+01 : f32
    %442 = vector.broadcast %cst_147 : f32 to vector<16x1xf32>
    %443 = arith.divf %441, %442 : vector<16x1xf32>
    %444 = vector.broadcast %443 : vector<16x1xf32> to vector<16x32xf32>
    %445 = arith.subf %439, %444 : vector<16x32xf32>
    %446 = arith.mulf %445, %445 : vector<16x32xf32>
    %cst_148 = arith.constant dense<0.000000e+00> : vector<16xf32>
    %447 = vector.multi_reduction <add>, %446, %cst_148 [1] : vector<16x32xf32> to vector<16xf32>
    %448 = vector.shape_cast %447 : vector<16xf32> to vector<16x1xf32>
    %cst_149 = arith.constant 3.200000e+01 : f32
    %449 = vector.broadcast %cst_149 : f32 to vector<16x1xf32>
    %450 = arith.divf %448, %449 : vector<16x1xf32>
    %451 = vector.broadcast %443 : vector<16x1xf32> to vector<16x32xf32>
    %452 = arith.subf %439, %451 : vector<16x32xf32>
    %cst_150 = arith.constant 9.99999974E-6 : f32
    %453 = vector.broadcast %cst_150 : f32 to vector<16x1xf32>
    %454 = arith.addf %450, %453 : vector<16x1xf32>
    %455 = math.rsqrt %454 : vector<16x1xf32>
    %456 = vector.broadcast %455 : vector<16x1xf32> to vector<16x32xf32>
    %457 = arith.mulf %452, %456 : vector<16x32xf32>
    %c1_151 = arith.constant 1 : index
    %c0_152 = arith.constant 0 : index
    %c0_153 = arith.constant 0 : index
    %458 = vector.load %arg9[%c1_151, %c0_152, %c0_153] : memref<2x1x32xf32, #tpu.memory_space<vmem>>, vector<1x1x32xf32>
    %459 = vector.shape_cast %458 : vector<1x1x32xf32> to vector<1x32xf32>
    %460 = vector.broadcast %459 : vector<1x32xf32> to vector<16x32xf32>
    %461 = arith.mulf %457, %460 : vector<16x32xf32>
    %c1_154 = arith.constant 1 : index
    %c0_155 = arith.constant 0 : index
    %c0_156 = arith.constant 0 : index
    %462 = vector.load %arg10[%c1_154, %c0_155, %c0_156] : memref<2x1x32xf32, #tpu.memory_space<vmem>>, vector<1x1x32xf32>
    %463 = vector.shape_cast %462 : vector<1x1x32xf32> to vector<1x32xf32>
    %464 = vector.broadcast %463 : vector<1x32xf32> to vector<16x32xf32>
    %465 = arith.addf %461, %464 : vector<16x32xf32>
    %466 = arith.truncf %465 : vector<16x32xf32> to vector<16x32xbf16>
    %c1_157 = arith.constant 1 : index
    %c0_158 = arith.constant 0 : index
    %c0_159 = arith.constant 0 : index
    %467 = vector.load %arg11[%c1_157, %c0_158, %c0_159] : memref<2x32x128xbf16, #tpu.memory_space<vmem>>, vector<1x32x128xbf16>
    %468 = vector.shape_cast %467 : vector<1x32x128xbf16> to vector<32x128xbf16>
    %cst_160 = arith.constant dense<0.000000e+00> : vector<16x128xf32>
    %469 = tpu.matmul %466, %468, %cst_160 {dimension_numbers = #tpu.dot_dimension_numbers<[1], [0], [0], [1], [0, 0, 1, 1], [], []>} : vector<16x32xbf16>, vector<32x128xbf16>, vector<16x128xf32> -> vector<16x128xf32>
    %c1_161 = arith.constant 1 : index
    %c0_162 = arith.constant 0 : index
    %c0_163 = arith.constant 0 : index
    %470 = vector.load %arg12[%c1_161, %c0_162, %c0_163] : memref<2x1x128xf32, #tpu.memory_space<vmem>>, vector<1x1x128xf32>
    %471 = vector.shape_cast %470 : vector<1x1x128xf32> to vector<1x128xf32>
    %472 = vector.broadcast %471 : vector<1x128xf32> to vector<16x128xf32>
    %473 = arith.addf %469, %472 : vector<16x128xf32>
    %cst_164 = arith.constant 5.000000e-01 : f32
    %474 = vector.broadcast %cst_164 : f32 to vector<16x128xf32>
    %475 = arith.mulf %474, %473 : vector<16x128xf32>
    %cst_165 = arith.constant 4.471500e-02 : f32
    %476 = vector.broadcast %cst_165 : f32 to vector<16x128xf32>
    %477 = arith.mulf %476, %473 : vector<16x128xf32>
    %478 = arith.mulf %477, %473 : vector<16x128xf32>
    %479 = arith.mulf %478, %473 : vector<16x128xf32>
    %480 = arith.addf %473, %479 : vector<16x128xf32>
    %cst_166 = arith.constant 0.797884583 : f32
    %481 = vector.broadcast %cst_166 : f32 to vector<16x128xf32>
    %482 = arith.mulf %481, %480 : vector<16x128xf32>
    %483 = math.tanh %482 : vector<16x128xf32>
    %cst_167 = arith.constant 1.000000e+00 : f32
    %484 = vector.broadcast %cst_167 : f32 to vector<16x128xf32>
    %485 = arith.addf %484, %483 : vector<16x128xf32>
    %486 = arith.mulf %475, %485 : vector<16x128xf32>
    %487 = arith.truncf %486 : vector<16x128xf32> to vector<16x128xbf16>
    %c1_168 = arith.constant 1 : index
    %c0_169 = arith.constant 0 : index
    %c0_170 = arith.constant 0 : index
    %488 = vector.load %arg13[%c1_168, %c0_169, %c0_170] : memref<2x128x32xbf16, #tpu.memory_space<vmem>>, vector<1x128x32xbf16>
    %489 = vector.shape_cast %488 : vector<1x128x32xbf16> to vector<128x32xbf16>
    %cst_171 = arith.constant dense<0.000000e+00> : vector<16x32xf32>
    %490 = tpu.matmul %487, %489, %cst_171 {dimension_numbers = #tpu.dot_dimension_numbers<[1], [0], [0], [1], [0, 0, 1, 1], [], []>} : vector<16x128xbf16>, vector<128x32xbf16>, vector<16x32xf32> -> vector<16x32xf32>
    %491 = arith.addf %439, %490 : vector<16x32xf32>
    %c1_172 = arith.constant 1 : index
    %c0_173 = arith.constant 0 : index
    %c0_174 = arith.constant 0 : index
    %492 = vector.load %arg14[%c1_172, %c0_173, %c0_174] : memref<2x1x32xf32, #tpu.memory_space<vmem>>, vector<1x1x32xf32>
    %493 = vector.shape_cast %492 : vector<1x1x32xf32> to vector<1x32xf32>
    %494 = vector.broadcast %493 : vector<1x32xf32> to vector<16x32xf32>
    %495 = arith.addf %491, %494 : vector<16x32xf32>
    %496 = vector.extract_strided_slice %495 {offsets = [0, 0], sizes = [8, 32], strides = [1, 1]} : vector<16x32xf32> to vector<8x32xf32>
    %c0_175 = arith.constant 0 : index
    %c0_176 = arith.constant 0 : index
    %c0_177 = arith.constant 0 : index
    %497 = vector.load %arg15[%c0_175, %c0_176, %c0_177] : memref<4x8x32xf32, #tpu.memory_space<vmem>>, vector<1x8x32xf32>
    %498 = vector.shape_cast %497 : vector<1x8x32xf32> to vector<8x32xf32>
    %499 = arith.mulf %496, %498 : vector<8x32xf32>
    %cst_178 = arith.constant dense<0.000000e+00> : vector<8xf32>
    %500 = vector.multi_reduction <add>, %499, %cst_178 [1] : vector<8x32xf32> to vector<8xf32>
    %501 = vector.shape_cast %500 : vector<8xf32> to vector<8x1xf32>
    %cst_179 = arith.constant dense<0.000000e+00> : vector<1xf32>
    %502 = vector.multi_reduction <add>, %501, %cst_179 [0] : vector<8x1xf32> to vector<1xf32>
    %503 = vector.shape_cast %502 : vector<1xf32> to vector<1x1xf32>
    %c1_180 = arith.constant 1 : index
    %c0_181 = arith.constant 0 : index
    %c0_182 = arith.constant 0 : index
    %504 = vector.load %arg15[%c1_180, %c0_181, %c0_182] : memref<4x8x32xf32, #tpu.memory_space<vmem>>, vector<1x8x32xf32>
    %505 = vector.shape_cast %504 : vector<1x8x32xf32> to vector<8x32xf32>
    %506 = arith.mulf %496, %505 : vector<8x32xf32>
    %cst_183 = arith.constant dense<0.000000e+00> : vector<8xf32>
    %507 = vector.multi_reduction <add>, %506, %cst_183 [1] : vector<8x32xf32> to vector<8xf32>
    %508 = vector.shape_cast %507 : vector<8xf32> to vector<8x1xf32>
    %cst_184 = arith.constant dense<0.000000e+00> : vector<1xf32>
    %509 = vector.multi_reduction <add>, %508, %cst_184 [0] : vector<8x1xf32> to vector<1xf32>
    %510 = vector.shape_cast %509 : vector<1xf32> to vector<1x1xf32>
    %c2 = arith.constant 2 : index
    %c0_185 = arith.constant 0 : index
    %c0_186 = arith.constant 0 : index
    %511 = vector.load %arg15[%c2, %c0_185, %c0_186] : memref<4x8x32xf32, #tpu.memory_space<vmem>>, vector<1x8x32xf32>
    %512 = vector.shape_cast %511 : vector<1x8x32xf32> to vector<8x32xf32>
    %513 = arith.mulf %496, %512 : vector<8x32xf32>
    %cst_187 = arith.constant dense<0.000000e+00> : vector<8xf32>
    %514 = vector.multi_reduction <add>, %513, %cst_187 [1] : vector<8x32xf32> to vector<8xf32>
    %515 = vector.shape_cast %514 : vector<8xf32> to vector<8x1xf32>
    %cst_188 = arith.constant dense<0.000000e+00> : vector<1xf32>
    %516 = vector.multi_reduction <add>, %515, %cst_188 [0] : vector<8x1xf32> to vector<1xf32>
    %517 = vector.shape_cast %516 : vector<1xf32> to vector<1x1xf32>
    %c3 = arith.constant 3 : index
    %c0_189 = arith.constant 0 : index
    %c0_190 = arith.constant 0 : index
    %518 = vector.load %arg15[%c3, %c0_189, %c0_190] : memref<4x8x32xf32, #tpu.memory_space<vmem>>, vector<1x8x32xf32>
    %519 = vector.shape_cast %518 : vector<1x8x32xf32> to vector<8x32xf32>
    %520 = arith.mulf %496, %519 : vector<8x32xf32>
    %cst_191 = arith.constant dense<0.000000e+00> : vector<8xf32>
    %521 = vector.multi_reduction <add>, %520, %cst_191 [1] : vector<8x32xf32> to vector<8xf32>
    %522 = vector.shape_cast %521 : vector<8xf32> to vector<8x1xf32>
    %cst_192 = arith.constant dense<0.000000e+00> : vector<1xf32>
    %523 = vector.multi_reduction <add>, %522, %cst_192 [0] : vector<8x1xf32> to vector<1xf32>
    %524 = vector.shape_cast %523 : vector<1xf32> to vector<1x1xf32>
    %525 = tpu.concatenate %503, %510, %517, %524 in 1 : vector<1x1xf32>, vector<1x1xf32>, vector<1x1xf32>, vector<1x1xf32> -> vector<1x4xf32>
    %526 = vector.extract_strided_slice %495 {offsets = [8, 0], sizes = [8, 32], strides = [1, 1]} : vector<16x32xf32> to vector<8x32xf32>
    %c0_193 = arith.constant 0 : index
    %c0_194 = arith.constant 0 : index
    %c0_195 = arith.constant 0 : index
    %527 = vector.load %arg15[%c0_193, %c0_194, %c0_195] : memref<4x8x32xf32, #tpu.memory_space<vmem>>, vector<1x8x32xf32>
    %528 = vector.shape_cast %527 : vector<1x8x32xf32> to vector<8x32xf32>
    %529 = arith.mulf %526, %528 : vector<8x32xf32>
    %cst_196 = arith.constant dense<0.000000e+00> : vector<8xf32>
    %530 = vector.multi_reduction <add>, %529, %cst_196 [1] : vector<8x32xf32> to vector<8xf32>
    %531 = vector.shape_cast %530 : vector<8xf32> to vector<8x1xf32>
    %cst_197 = arith.constant dense<0.000000e+00> : vector<1xf32>
    %532 = vector.multi_reduction <add>, %531, %cst_197 [0] : vector<8x1xf32> to vector<1xf32>
    %533 = vector.shape_cast %532 : vector<1xf32> to vector<1x1xf32>
    %c1_198 = arith.constant 1 : index
    %c0_199 = arith.constant 0 : index
    %c0_200 = arith.constant 0 : index
    %534 = vector.load %arg15[%c1_198, %c0_199, %c0_200] : memref<4x8x32xf32, #tpu.memory_space<vmem>>, vector<1x8x32xf32>
    %535 = vector.shape_cast %534 : vector<1x8x32xf32> to vector<8x32xf32>
    %536 = arith.mulf %526, %535 : vector<8x32xf32>
    %cst_201 = arith.constant dense<0.000000e+00> : vector<8xf32>
    %537 = vector.multi_reduction <add>, %536, %cst_201 [1] : vector<8x32xf32> to vector<8xf32>
    %538 = vector.shape_cast %537 : vector<8xf32> to vector<8x1xf32>
    %cst_202 = arith.constant dense<0.000000e+00> : vector<1xf32>
    %539 = vector.multi_reduction <add>, %538, %cst_202 [0] : vector<8x1xf32> to vector<1xf32>
    %540 = vector.shape_cast %539 : vector<1xf32> to vector<1x1xf32>
    %c2_203 = arith.constant 2 : index
    %c0_204 = arith.constant 0 : index
    %c0_205 = arith.constant 0 : index
    %541 = vector.load %arg15[%c2_203, %c0_204, %c0_205] : memref<4x8x32xf32, #tpu.memory_space<vmem>>, vector<1x8x32xf32>
    %542 = vector.shape_cast %541 : vector<1x8x32xf32> to vector<8x32xf32>
    %543 = arith.mulf %526, %542 : vector<8x32xf32>
    %cst_206 = arith.constant dense<0.000000e+00> : vector<8xf32>
    %544 = vector.multi_reduction <add>, %543, %cst_206 [1] : vector<8x32xf32> to vector<8xf32>
    %545 = vector.shape_cast %544 : vector<8xf32> to vector<8x1xf32>
    %cst_207 = arith.constant dense<0.000000e+00> : vector<1xf32>
    %546 = vector.multi_reduction <add>, %545, %cst_207 [0] : vector<8x1xf32> to vector<1xf32>
    %547 = vector.shape_cast %546 : vector<1xf32> to vector<1x1xf32>
    %c3_208 = arith.constant 3 : index
    %c0_209 = arith.constant 0 : index
    %c0_210 = arith.constant 0 : index
    %548 = vector.load %arg15[%c3_208, %c0_209, %c0_210] : memref<4x8x32xf32, #tpu.memory_space<vmem>>, vector<1x8x32xf32>
    %549 = vector.shape_cast %548 : vector<1x8x32xf32> to vector<8x32xf32>
    %550 = arith.mulf %526, %549 : vector<8x32xf32>
    %cst_211 = arith.constant dense<0.000000e+00> : vector<8xf32>
    %551 = vector.multi_reduction <add>, %550, %cst_211 [1] : vector<8x32xf32> to vector<8xf32>
    %552 = vector.shape_cast %551 : vector<8xf32> to vector<8x1xf32>
    %cst_212 = arith.constant dense<0.000000e+00> : vector<1xf32>
    %553 = vector.multi_reduction <add>, %552, %cst_212 [0] : vector<8x1xf32> to vector<1xf32>
    %554 = vector.shape_cast %553 : vector<1xf32> to vector<1x1xf32>
    %555 = tpu.concatenate %533, %540, %547, %554 in 1 : vector<1x1xf32>, vector<1x1xf32>, vector<1x1xf32>, vector<1x1xf32> -> vector<1x4xf32>
    %556 = tpu.concatenate %525, %555 in 0 : vector<1x4xf32>, vector<1x4xf32> -> vector<2x4xf32>
    %c0_213 = arith.constant 0 : index
    %c0_214 = arith.constant 0 : index
    %557 = vector.load %arg16[%c0_213, %c0_214] : memref<1x4xf32, #tpu.memory_space<vmem>>, vector<1x4xf32>
    %558 = vector.broadcast %557 : vector<1x4xf32> to vector<2x4xf32>
    %559 = arith.addf %556, %558 : vector<2x4xf32>
    %c0_215 = arith.constant 0 : index
    %c0_216 = arith.constant 0 : index
    %560 = vector.load %arg17[%c0_215, %c0_216] : memref<2x4xf32, #tpu.memory_space<vmem>>, vector<2x4xf32>
    tpu.vector_store %arg17[%c0_215, %c0_216], %559 {strides = array<i32>} : memref<2x4xf32, #tpu.memory_space<vmem>>, vector<2x4xf32>,
    return
  }
}

</mosaic_0001>

<bundles_post_ra>
// kernel: performer_head_forward.1
= control target key start
LH: loop header
LB: loop body
LE: loop exit
PB: predicated region body
PF: predicated region fallthrough
CT: control target
= control target key end

     0   :  { %s3478_s0 = inlined_call_operand.vmem [shape: f32[16,32], index: 0, kind: input, shape index: {}]   ;;  %s3479_s1 = inlined_call_operand.vmem [shape: f32[16,16], index: 1, kind: input, shape index: {}]   ;;  %s3480_s2 = inlined_call_operand.vmem [shape: f32[1,128], index: 2, kind: input, shape index: {}]   ;;  %s3481_s3 = inlined_call_operand.vmem [shape: f32[2,1,32], index: 3, kind: input, shape index: {}]   ;;  %s3482_s4 = inlined_call_operand.vmem [shape: f32[2,1,32], index: 4, kind: input, shape index: {}]   ;;  %s3483_s5 = inlined_call_operand.vmem [shape: bf16[2,32,704], index: 5, kind: input, shape index: {}]   ;;  %s3484_s6 = inlined_call_operand.vmem [shape: f32[2,1,704], index: 6, kind: input, shape index: {}]   ;;  %s3485_s7 = inlined_call_operand.vmem [shape: bf16[2,64,32], index: 7, kind: input, shape index: {}]   ;;  %s3486_s8 = inlined_call_operand.vmem [shape: f32[2,1,32], index: 8, kind: input, shape index: {}]   ;;  %s3487_s9 = inlined_call_operand.vmem [shape: f32[2,1,32], index: 9, kind: input, shape index: {}]   ;;  %s3488_s10 = inlined_call_operand.vmem [shape: f32[2,1,32], index: 10, kind: input, shape index: {}]   ;;  %s3489_s11 = inlined_call_operand.vmem [shape: bf16[2,32,128], index: 11, kind: input, shape index: {}]   ;;  %s3490_s12 = inlined_call_operand.vmem [shape: f32[2,1,128], index: 12, kind: input, shape index: {}]   ;;  %s3491_s13 = inlined_call_operand.vmem [shape: bf16[2,128,32], index: 13, kind: input, shape index: {}]   ;;  %s3492_s14 = inlined_call_operand.vmem [shape: f32[2,1,32], index: 14, kind: input, shape index: {}]   ;;  %s3493_s15 = inlined_call_operand.vmem [shape: f32[4,8,32], index: 15, kind: input, shape index: {}]   ;;  %s3494_s16 = inlined_call_operand.vmem [shape: f32[1,4], index: 16, kind: input, shape index: {}]   ;;  %s3495_s17 = inlined_call_operand.hbm [shape: f32[2,4], index: 17, kind: output, shape index: {}]  }
   0x1   :  { %3498 = sst [smem:[#allocation5_spill]] %s3478_s0 }
   0x2   :  { %3499 = sst [smem:[#allocation6_spill]] %s3479_s1 }
   0x3   :  { %s3500_s26 = sld [smem:[#allocation5_spill]]  ;;  %vm65_vm0 = vcmask 261120  }
   0x9   :  { %v2838_v0 = vld [vmem:[%s3500_s26] sm:$0xff]  ;;  %v2843_v1 = vld [vmem:[%s3500_s26 + $0x8] sm:$0xff] }
   0xa   :  { %v66_v2 = vsel %vm65_vm0, %v2838_v0, 0.0  ;;  %v69_v3 = vsel %vm65_vm0, %v2843_v1, 0.0 }
   0xb   :  { %67 = vadd.xlane.f32.xlu0 %v66_v2 }
   0xf   :  { %70 = vadd.xlane.f32.xlu0 %v69_v3 }
  0x10   :  { %22 = vsyncpa [#allocation3], 0  ;;  %v2578_v14 = vld [vmem:[%s3483_s5 + $0x4] ss:$24 sps:$4 sm:$0xff]   ;;  %v2580_v15 = vld [vmem:[%s3483_s5] ss:$24 sps:$4 sm:$0xff]   ;;  %v126_v45 = vlaneseq }
  0x11   :  { %219 = vmatprep.subr.bf16.mxu1 %v2578_v14  ;;  %v2581_v16 = vld [vmem:[%s3483_s5 + $0x34] ss:$24 sps:$4 sm:$0xff]   ;;  %v2583_v17 = vld [vmem:[%s3483_s5 + $0x30] ss:$24 sps:$4 sm:$0xff]   ;;  %v2738_v18 = vmov 0   ;;  %v2739_v44 = vmov 0.0  }
  0x12   :  { %220 = vmatpush1.bf16.msra.mxu1 %v2580_v15  ;;  %251 = vmatprep.mubr.bf16.mxu1 %v2738_v18  ;;  %v2586_v19 = vld [vmem:[%s3483_s5 + $0xc] ss:$24 sps:$4 sm:$0xff]   ;;  %v2249_v28 = vld [vmem:[%s3481_s3] ss:$0 sm:$0xff]  ;;  %v2589_v38 = vld [vmem:[%s3483_s5 + $0x3c] ss:$24 sps:$4 sm:$0xff]  }
  0x13   :  { %221 = vmatprep.subr.bf16.mxu1 %v2581_v16  ;;  %2566 = vset.pattern.permute.xlu0 %v2738_v18  ;;  %v2250_v32 = vld [vmem:[%s3482_s4] ss:$0 sm:$0xff]  ;;  %v2587_v39 = vld [vmem:[%s3483_s5 + $0x38] ss:$24 sps:$4 sm:$0xff]   ;;  %v2592_v40 = vld [vmem:[%s3483_s5 + $0x14] ss:$24 sps:$4 sm:$0xff]  }
  0x14   :  { %2567 = vset.pattern.permute.xlu1 %v2738_v18  ;;  %v2584_v36 = vld [vmem:[%s3483_s5 + $0x8] ss:$24 sps:$4 sm:$0xff]   ;;  %v2595_v42 = vld [vmem:[%s3483_s5 + $0x44] ss:$24 sps:$4 sm:$0xff]   ;;  %2437 = vmatprep.subr.bf16.mxu0 %v2739_v44  ;;  %v2910_v47 = vshrl.u32 %v126_v45, 7  ;;  %s2741_s30 = smov 64  }
  0x15   :  { %v2590_v41 = vld [vmem:[%s3483_s5 + $0x10] ss:$24 sps:$4 sm:$0xff]   ;;  %v2593_v43 = vld [vmem:[%s3483_s5 + $0x40] ss:$24 sps:$4 sm:$0xff]   ;;  %s2742_s18 = smov 32   ;;  %vm2743_vm1 = vmmov 0  }
  0x16   :  { %222 = vmatpush1.bf16.msra.mxu1 %v2583_v17  ;;  %v2908_v46 = vld [vmem:[%s3480_s2] sm:$0x1]  ;;  %v2914_v49 = vsub.s32 0, %v2910_v47  ;;  %v136_v57 = vsub.s32 2, %v2910_v47  ;;  %v140_v59 = vsub.s32 3, %v2910_v47  ;;  %s2740_s2 = smov 96   ;;  %2439 = vmatprep.mubr.msk.bf16.mxu0 %vm2743_vm1, %v2739_v44 }
  0x17   :  { %262 = vmatprep.subr.bf16.mxu1 %v2586_v19  ;;  %v2248_v48 = vadd.f32 -1.0, %v2908_v46  ;;  %v2919_v50 = vld [vmem:[%s3484_s6] sm:$0x3f]  ;;  %s3501_s20 = sld [smem:[#allocation6_spill]]  ;;  %vm518_vm2 = vcmask 130048   ;;  %vm804_vm3 = vcmask 523264  }
  0x18   :  { %v129_v52 = vrot.slane %v2919_v50, %v2914_v49  ;;  %v137_v2 = vrot.slane %v2919_v50, %v136_v57  ;;  %v141_v3 = vrot.slane %v2919_v50, %v140_v59  ;;  %vm2170_vm4 = vcmask 7168  }
  0x19   :  { %v64_v51 = vmul.f32 1e+30, %v2248_v48  ;;  %vm2172_vm5 = vcmask 15360   ;;  %vm2174_vm6 = vcmask 23552   ;;  %vm2222_vm7 = vcmask 1040384  }
  0x1a   :  { %vm2232_vm8 = vcmask 25600  }
  0x1b   :  { %v2924_v53 = vrot.slane %v64_v51, %v2914_v49 }
  0x98   :  { %v68_v4 = vpop.xlane.xlu0 %67 }
  0x99   :  { %v73_v5 = vmul.f32 0.03125, %v68_v4 }
  0x9b   :  { %v75_v6 = vsub.f32 %v2838_v0, %v73_v5 }
  0x9c   :  { %v71_v7 = vpop.xlane.xlu0 %70 }
  0x9d   :  { %v74_v8 = vmul.f32 0.03125, %v71_v7  ;;  %v77_v9 = vmul.f32 %v75_v6, %v75_v6 }
  0x9f   :  { %v76_v10 = vsub.f32 %v2843_v1, %v74_v8  ;;  %v79_v11 = vsel %vm65_vm0, %v77_v9, 0.0 }
  0xa0   :  { %80 = vadd.xlane.f32.xlu1 %v79_v11 }
  0xa1   :  { %v78_v12 = vmul.f32 %v76_v10, %v76_v10 }
  0xa3   :  { %v82_v13 = vsel %vm65_vm0, %v78_v12, 0.0  ;;  %v144_v12 = vsub.s32 4, %v2910_v47 }
  0xa4   :  { %83 = vadd.xlane.f32.xlu1 %v82_v13 }
  0xa5   :  { %v145_v19 = vrot.slane %v2919_v50, %v144_v12 }
 0x12d   :  { %v81_v20 = vpop.xlane.xlu1 %80 }
 0x12e   :  { %v85_v21 = vmul.f32 0.03125, %v81_v20 }
 0x130   :  { %v87_v22 = vadd.f32 1e-05, %v85_v21 }
 0x131   :  { %v84_v23 = vpop.xlane.xlu1 %83 }
 0x132   :  { %2642 = vrsqrt.f32 %v87_v22  ;;  %v86_v24 = vmul.f32 0.03125, %v84_v23 }
 0x134   :  { %v88_v25 = vadd.f32 1e-05, %v86_v24 }
 0x136   :  { %2644 = vrsqrt.f32 %v88_v25 }
 0x13c   :  { %v2643_v26 = vpop.eup %2642 }
 0x13d   :  { %v91_v27 = vmul.f32 %v2643_v26, %v75_v6 }
 0x13f   :  { %v100_v31 = vmul.f32 %v2249_v28, %v91_v27  ;;  %v148_v27 = vsub.s32 5, %v2910_v47 }
 0x140   :  { %v2645_v29 = vpop.eup %2644 }
 0x141   :  { %v92_v30 = vmul.f32 %v2645_v29, %v76_v10  ;;  %v109_v34 = vadd.f32 %v2250_v32, %v100_v31  ;;  %v149_v29 = vrot.slane %v2919_v50, %v148_v27 }
 0x143   :  { %v101_v33 = vmul.f32 %v2249_v28, %v92_v30 }
 0x145   :  { %v110_v35 = vadd.f32 %v2250_v32, %v101_v33 }
 0x147   :  { %v111_v37 = vpack.c.bf16 %v110_v35, %v109_v34 }
 0x149   :  { %2263 = vmatmul.mubr.msk.bf16.vlgmr.msra.gmra.mrb[0].mxu1 %vm65_vm0, %v111_v37 }
 0x14a   :  { %263 = vmatpush1.bf16.msra.mxu1 %v2584_v36  ;;  %294 = vmatprep.mubr.bf16.mxu1 %v2738_v18 }
 0x14b   :  { %264 = vmatprep.subr.bf16.mxu1 %v2589_v38 }
 0x14e   :  { %265 = vmatpush1.bf16.msra.mxu1 %v2587_v39 }
 0x14f   :  { %305 = vmatprep.subr.bf16.mxu1 %v2592_v40 }
 0x151   :  { %2264 = vmatmul.mubr.msk.bf16.vlgmr.msra.gmra.mrb[4].mxu1 %vm65_vm0, %v111_v37 }
 0x152   :  { %306 = vmatpush1.bf16.msra.mxu1 %v2590_v41  ;;  %337 = vmatprep.mubr.bf16.mxu1 %v2738_v18 }
 0x153   :  { %307 = vmatprep.subr.bf16.mxu1 %v2595_v42 }
 0x156   :  { %308 = vmatpush1.bf16.msra.mxu1 %v2593_v43 }
 0x157   :  { %2431 = vmatprep.subr.bf16.mxu1 %v2739_v44 }
 0x159   :  { %2265 = vmatmul.mubr.msk.bf16.vlgmr.msra.gmra.mrb[8].mxu1 %vm65_vm0, %v111_v37 }
 0x15a   :  { %2433 = vmatprep.mubr.msk.bf16.mxu1 %vm2743_vm1, %v2739_v44 }
 0x21c   :  { %v253_v54 = vpop.f32.mrb[0].mxu1 }
 0x21d   :  { %v2926_v55 = vadd.f32 %v253_v54, %v129_v52  ;;  %v2928_v56 = vpop.f32.mrb[1].mxu1  ;;  %v132_v54 = vsub.s32 1, %v2910_v47 }
 0x21e   :  { %v257_v58 = vpop.f32.mrb[2].mxu1 }
 0x21f   :  { %v2932_v60 = vadd.f32 %v257_v58, %v129_v52  ;;  %v2934_v61 = vpop.f32.mrb[3].mxu1  ;;  %v417_v62 = vadd.f32 %v2924_v53, %v2926_v55 }
 0x221   :  { %419 = vmax.xlane.f32.xlu0 %v417_v62  ;;  %v418_v63 = vadd.f32 %v2924_v53, %v2932_v60 }
 0x223   :  { %421 = vmax.xlane.f32.xlu1 %v418_v63  ;;  %v133_v63 = vrot.slane %v2919_v50, %v132_v54 }
 0x224   :  { %v296_v4 = vpop.f32.mrb[4].mxu1 }
 0x225   :  { %v2946_v5 = vadd.f32 %v296_v4, %v137_v2  ;;  %v298_v6 = vpop.f32.mrb[5].mxu1  ;;  %v256_v4 = vadd.f32 %v2928_v56, %v133_v63 }
 0x226   :  { %v2948_v7 = vadd.f32 %v298_v6, %v141_v3  ;;  %v300_v8 = vpop.f32.mrb[6].mxu1 }
 0x227   :  { %v352_v9 = vadd.f32 %v2924_v53, %v2946_v5  ;;  %v2952_v10 = vadd.f32 %v300_v8, %v137_v2  ;;  %v302_v11 = vpop.f32.mrb[7].mxu1 }
 0x228   :  { %v353_v13 = vadd.f32 %v2924_v53, %v2948_v7  ;;  %v2957_v14 = vadd.f32 %v302_v11, %v141_v3 }
 0x229   :  { %v354_v15 = vadd.f32 %v2924_v53, %v2952_v10 }
 0x22a   :  { %v355_v16 = vadd.f32 %v2924_v53, %v2957_v14  ;;  %v356_v17 = vmax.f32 %v352_v9, %v353_v13 }
 0x22c   :  { %v339_v20 = vpop.f32.mrb[8].mxu1  ;;  %357 = vmax.xlane.f32.xlu0 %v356_v17  ;;  %v359_v21 = vmax.f32 %v354_v15, %v355_v16  ;;  %v611_v15 = vadd.f32 %v2924_v53, %v256_v4 }
 0x22d   :  { %v341_v22 = vpop.f32.mrb[9].mxu1  ;;  %v340_v24 = vadd.f32 %v339_v20, %v145_v19 }
 0x22e   :  { %v343_v23 = vpop.f32.mrb[10].mxu1  ;;  %360 = vmax.xlane.f32.xlu1 %v359_v21  ;;  %v342_v30 = vadd.f32 %v341_v22, %v149_v29 }
 0x22f   :  { %v344_v25 = vadd.f32 %v343_v23, %v145_v19  ;;  %v345_v26 = vpop.f32.mrb[11].mxu1  ;;  %v383_v32 = vmul.f32 %v340_v24, %v340_v24 }
 0x230   :  { %v401_v31 = vmul.f32 %v342_v30, %v342_v30  ;;  %v346_v34 = vadd.f32 %v345_v26, %v149_v29 }
 0x231   :  { %v2967_v28 = vpack.c.bf16 %v344_v25, %v340_v24  ;;  %v384_v33 = vmul.f32 %v344_v25, %v344_v25  ;;  %v3001_v24 = vadd.f32 %v2934_v61, %v133_v63 }
 0x232   :  { %v402_v35 = vmul.f32 %v346_v34, %v346_v34  ;;  %v403_v36 = vsel %vm65_vm0, %v401_v31, 0.0 }
 0x233   :  { %2438 = vmatpush3.bf16.msra.mxu0 %v2967_v28  ;;  %v612_v25 = vadd.f32 %v2924_v53, %v3001_v24 }
 0x234   :  { %2449 = vmatprep.subr.bf16.mxu0 %v2739_v44  ;;  %v406_v37 = vsel %vm65_vm0, %v402_v35, 0.0 }
 0x23f   :  { %597 = vrot.lane.b32.xlu1 %v401_v31, %s2740_s2 }
 0x242   :  { %387 = vrot.lane.b32.xlu0 %v383_v32, %s2741_s30 }
 0x243   :  { %389 = vrot.lane.b32.xlu1 %v384_v33, %s2741_s30 }
 0x246   :  { %581 = vrot.lane.b32.xlu0 %v383_v32, %s2742_s18 }
 0x247   :  { %583 = vrot.lane.b32.xlu1 %v384_v33, %s2742_s18 }
 0x24b   :  { %599 = vrot.lane.b32.xlu1 %v402_v35, %s2740_s2 }
 0x265   :  { %404 = vadd.xlane.f32.xlu0 %v403_v36 }
 0x26f   :  { %407 = vadd.xlane.f32.xlu1 %v406_v37 }
 0x2ae   :  { %v420_v38 = vpop.xlane.xlu0 %419 }
 0x2b0   :  { %v2982_v39 = vpop.xlane.xlu1 %421 }
 0x2b9   :  { %v358_v40 = vpop.xlane.xlu0 %357 }
 0x2ba   :  { %v362_v2 = vrot.slane %v358_v40, 4 }
 0x2bb   :  { %v361_v41 = vpop.xlane.xlu1 %360 }
 0x2bc   :  { %v363_v6 = vmax.f32 %v358_v40, %v362_v2  ;;  %v368_v9 = vrot.slane %v361_v41, 4 }
 0x2bd   :  { %v388_v42 = vpop.permute.xlu0 %387 }
 0x2be   :  { %v393_v43 = vsel %vm65_vm0, %v388_v42, 0.0  ;;  %v364_v13 = vrot.slane %v363_v6, 2  ;;  %v369_v16 = vmax.f32 %v361_v41, %v368_v9 }
 0x2bf   :  { %v598_v45 = vpop.permute.xlu1 %597  ;;  %394 = vadd.xlane.f32.xlu0 %v393_v43 }
 0x2c0   :  { %v603_v51 = vsel %vm65_vm0, %v598_v45, 0.0  ;;  %v365_v17 = vmax.f32 %v363_v6, %v364_v13  ;;  %v370_v19 = vrot.slane %v369_v16, 2 }
 0x2c1   :  { %v582_v48 = vpop.permute.xlu0 %581 }
 0x2c2   :  { %v587_v52 = vsel %vm65_vm0, %v582_v48, 0.0  ;;  %v366_v20 = vrot.slane %v365_v17, 1  ;;  %v371_v50 = vmax.f32 %v369_v16, %v370_v19 }
 0x2c3   :  { %v390_v58 = vpop.permute.xlu1 %389  ;;  %604 = vadd.xlane.f32.xlu0 %v603_v51  ;;  %588 = vadd.xlane.f32.xlu1 %v587_v52 }
 0x2c4   :  { %v396_v62 = vsel %vm65_vm0, %v390_v58, 0.0  ;;  %v367_v21 = vmax.f32 %v365_v17, %v366_v20  ;;  %v372_v22 = vrot.slane %v371_v50, 1 }
 0x2c6   :  { %v373_v23 = vmax.f32 %v371_v50, %v372_v22 }
 0x2c7   :  { %v584_v3 = vpop.permute.xlu1 %583  ;;  %397 = vadd.xlane.f32.xlu0 %v396_v62 }
 0x2c8   :  { %v590_v56 = vsel %vm65_vm0, %v584_v3, 0.0 }
 0x2cb   :  { %v600_v8 = vpop.permute.xlu1 %599 }
 0x2cc   :  { %v606_v11 = vsel %vm65_vm0, %v600_v8, 0.0 }
 0x2cd   :  { %607 = vadd.xlane.f32.xlu1 %v606_v11 }
 0x2d1   :  { %613 = vmax.xlane.f32.xlu1 %v611_v15 }
 0x2dd   :  { %449 = vperm.xlu0 %2566, %v367_v21  }
 0x2e2   :  { %454 = vperm.xlu1 %2567, %v373_v23  }
 0x2f2   :  { %v405_v26 = vpop.xlane.xlu0 %404 }
 0x2f3   :  { %v409_v37 = vmul.f32 0.5, %v405_v26 }
 0x2f5   :  { %v445_v45 = vsub.f32 %v2946_v5, %v409_v37 }
 0x2fc   :  { %591 = vadd.xlane.f32.xlu0 %v590_v56  ;;  %v408_v31 = vpop.xlane.xlu1 %407 }
 0x2fd   :  { %v410_v52 = vmul.f32 0.5, %v408_v31 }
 0x2ff   :  { %v446_v5 = vsub.f32 %v2952_v10, %v410_v52 }
 0x306   :  { %615 = vmax.xlane.f32.xlu1 %v612_v25 }
 0x317   :  { %696 = vrot.lane.b32.xlu1 %v2967_v28, %s2740_s2 }
 0x34c   :  { %v395_v29 = vpop.xlane.xlu0 %394 }
 0x34d   :  { %v399_v32 = vmul.f32 0.5, %v395_v29  ;;  %v3023_v29 = vrot.slane %v2908_v46, %v2914_v49 }
 0x34f   :  { %v423_v35 = vsub.f32 %v2926_v55, %v399_v32 }
 0x350   :  { %v605_v30 = vpop.xlane.xlu0 %604  ;;  %v589_v36 = vpop.xlane.xlu1 %588 }
 0x351   :  { %v609_v61 = vmul.f32 0.5, %v605_v30  ;;  %v593_v41 = vmul.f32 0.5, %v589_v36  ;;  %v425_v42 = vsub.f32 %v423_v35, %v420_v38 }
 0x353   :  { %v633_v28 = vsub.f32 %v2948_v7, %v609_v61  ;;  %v617_v63 = vsub.f32 %v256_v4, %v593_v41  ;;  %v427_v55 = vadd.f32 %v425_v42, %v2924_v53 }
 0x354   :  { %v398_v33 = vpop.xlane.xlu0 %397 }
 0x355   :  { %v400_v34 = vmul.f32 0.5, %v398_v33  ;;  %v429_v9 = vmul.f32 1.442695, %v427_v55 }
 0x357   :  { %v424_v40 = vsub.f32 %v2932_v60, %v400_v34 }
 0x359   :  { %v426_v48 = vsub.f32 %v424_v40, %v2982_v39 }
 0x35a   :  { %v608_v43 = vpop.xlane.xlu1 %607 }
 0x35b   :  { %v610_v58 = vmul.f32 0.5, %v608_v43  ;;  %v428_v38 = vadd.f32 %v426_v48, %v2924_v53 }
 0x35c   :  { %v450_v51 = vpop.permute.xlu0 %449 }
 0x35d   :  { %v457_v62 = vsub.f32 %v445_v45, %v450_v51  ;;  %v635_v2 = vsub.f32 %v633_v28, %v450_v51  ;;  %v634_v7 = vsub.f32 %v2957_v14, %v610_v58  ;;  %v431_v17 = vmul.f32 1.442695, %v428_v38 }
 0x35e   :  { %v614_v3 = vpop.xlane.xlu1 %613 }
 0x35f   :  { %v459_v60 = vadd.f32 %v457_v62, %v2924_v53  ;;  %v619_v6 = vsub.f32 %v617_v63, %v614_v3  ;;  %v637_v11 = vadd.f32 %v635_v2, %v2924_v53 }
 0x361   :  { %v461_v8 = vmul.f32 1.442695, %v459_v60  ;;  %v621_v39 = vadd.f32 %v619_v6, %v2924_v53  ;;  %v639_v10 = vmul.f32 1.442695, %v637_v11 }
 0x362   :  { %v455_v4 = vpop.permute.xlu1 %454 }
 0x363   :  { %2646 = vpow2.f32 %v461_v8  ;;  %v623_v13 = vmul.f32 1.442695, %v621_v39  ;;  %v458_v15 = vsub.f32 %v446_v5, %v455_v4  ;;  %v636_v16 = vsub.f32 %v634_v7, %v455_v4 }
 0x365   :  { %2648 = vpow2.f32 %v623_v13  ;;  %v460_v19 = vadd.f32 %v458_v15, %v2924_v53  ;;  %v638_v20 = vadd.f32 %v636_v16, %v2924_v53 }
 0x366   :  { %2650 = vpow2.f32 %v429_v9 }
 0x367   :  { %v463_v14 = vmul.f32 1.442695, %v460_v19  ;;  %v641_v50 = vmul.f32 1.442695, %v638_v20  ;;  %2652 = vpow2.f32 %v431_v17  ;;  %v3049_v17 = vld [vmem:[%s3501_s20 + $0x8] sm:$0xff] }
 0x369   :  { %2654 = vpow2.f32 %v463_v14 }
 0x36a   :  { %2656 = vpow2.f32 %v641_v50 }
 0x36b   :  { %2658 = vpow2.f32 %v639_v10 }
 0x36d   :  { %v2647_v21 = vpop.eup %2646 }
 0x36e   :  { %v465_v23 = vadd.f32 0.0001, %v2647_v21 }
 0x36f   :  { %v2649_v22 = vpop.eup %2648 }
 0x370   :  { %v627_v56 = vadd.f32 0.0001, %v2649_v22  ;;  %v2651_v25 = vpop.eup %2650  ;;  %v467_v33 = vmul.f32 0.09534626, %v465_v23 }
 0x371   :  { %v2653_v26 = vpop.eup %2652  ;;  %v433_v41 = vadd.f32 0.0001, %v2651_v25 }
 0x372   :  { %v629_v30 = vmul.f32 0.09534626, %v627_v56  ;;  %v434_v37 = vadd.f32 0.0001, %v2653_v26  ;;  %v469_v43 = vmul.f32 %v467_v33, %v3023_v29 }
 0x373   :  { %v2655_v31 = vpop.eup %2654  ;;  %v435_v51 = vmul.f32 0.09534626, %v433_v41 }
 0x374   :  { %v2657_v32 = vpop.eup %2656  ;;  %v466_v34 = vadd.f32 0.0001, %v2655_v31  ;;  %v631_v35 = vmul.f32 %v629_v30, %v3023_v29  ;;  %v436_v46 = vmul.f32 0.09534626, %v434_v37  ;;  %v2596_v37 = vld [vmem:[%s3485_s7] sm:$0xff]  }
 0x375   :  { %v2659_v36 = vpop.eup %2658  ;;  %v644_v40 = vadd.f32 0.0001, %v2657_v32  ;;  %v443_v63 = vmul.f32 %v3023_v29, %v435_v51 }
 0x376   :  { %v468_v61 = vmul.f32 0.09534626, %v466_v34  ;;  %749 = vadd.xlane.f32.xlu0 %v631_v35  ;;  %v643_v42 = vadd.f32 0.0001, %v2659_v36  ;;  %v444_v58 = vmul.f32 %v3023_v29, %v436_v46 }
 0x377   :  { %v646_v28 = vmul.f32 0.09534626, %v644_v40  ;;  %v2598_v40 = vld [vmem:[%s3485_s7 + $0x10] sm:$0xff]  }
 0x378   :  { %v470_v45 = vmul.f32 %v468_v61, %v3023_v29  ;;  %v645_v52 = vmul.f32 0.09534626, %v643_v42  ;;  %v471_v2 = vpack.c.bf16 %v444_v58, %v443_v63  ;;  %v2597_v61 = vld [vmem:[%s3485_s7 + $0x8] sm:$0xff]  }
 0x379   :  { %v648_v62 = vmul.f32 %v646_v28, %v3023_v29 }
 0x37a   :  { %v472_v48 = vpack.c.bf16 %v470_v45, %v469_v43  ;;  %v647_v55 = vmul.f32 %v645_v52, %v3023_v29 }
 0x37c   :  { %2432 = vmatpush3.bf16.xpose.msra.mxu1 %v472_v48  ;;  %v650_v3 = vpack.c.bf16 %v648_v62, %v647_v55  ;;  %v2599_v55 = vld [vmem:[%s3485_s7 + $0x18] sm:$0xff]  }
 0x37d   :  { %2443 = vmatprep.subr.bf16.mxu1 %v2739_v44 }
 0x383   :  { %2434 = vmatmul.mubr.bf16.vlgmr.msra.gmra.mrb[12].mxu1 %v471_v2 }
 0x384   :  { %2444 = vmatpush3.bf16.xpose.msra.mxu1 %v650_v3  ;;  %2445 = vmatprep.mubr.msk.bf16.mxu1 %vm2743_vm1, %v2739_v44 }
 0x385   :  { %2455 = vmatprep.subr.bf16.mxu1 %v2739_v44 }
 0x389   :  { %v592_v60 = vpop.xlane.xlu0 %591 }
 0x38a   :  { %v594_v6 = vmul.f32 0.5, %v592_v60 }
 0x38c   :  { %v618_v38 = vsub.f32 %v3001_v24, %v594_v6  ;;  %v3044_v24 = vld [vmem:[%s3501_s20] sm:$0xff]  ;;  %s2744_s20 = smov [#allocation2]  }
 0x393   :  { %v616_v5 = vpop.xlane.xlu1 %615 }
 0x394   :  { %v620_v7 = vsub.f32 %v618_v38, %v616_v5 }
 0x396   :  { %v622_v8 = vadd.f32 %v620_v7, %v2924_v53 }
 0x397   :  { %v697_v22 = vpop.permute.xlu1 %696 }
 0x398   :  { %v625_v39 = vmul.f32 1.442695, %v622_v8 }
 0x39a   :  { %2660 = vpow2.f32 %v625_v39 }
 0x3a4   :  { %v2661_v9 = vpop.eup %2660 }
 0x3a5   :  { %v628_v11 = vadd.f32 0.0001, %v2661_v9 }
 0x3a7   :  { %v630_v4 = vmul.f32 0.09534626, %v628_v11 }
 0x3a9   :  { %v632_v13 = vmul.f32 %v630_v4, %v3023_v29 }
 0x3ab   :  { %751 = vadd.xlane.f32.xlu1 %v632_v13  ;;  %v649_v15 = vpack.c.bf16 %v632_v13, %v631_v35 }
 0x3ad   :  { %2446 = vmatmul.mubr.bf16.vlgmr.msra.gmra.mrb[16].mxu1 %v649_v15 }
 0x3ae   :  { %2463 = vmatprep.mubr.msk.bf16.mxu1 %vm2743_vm1, %v2739_v44  ;;  %2456 = vmatpush3.bf16.msra.mxu1 %v2596_v37 }
 0x3af   :  { %2457 = vmatprep.subr.bf16.mxu1 %v2739_v44 }
 0x3b2   :  { %2458 = vmatpush3.bf16.msra.mxu1 %v2597_v61 }
 0x3b3   :  { %2459 = vmatprep.subr.bf16.mxu1 %v2739_v44 }
 0x3b6   :  { %2460 = vmatpush3.bf16.msra.mxu1 %v2598_v40 }
 0x3b7   :  { %2461 = vmatprep.subr.bf16.mxu1 %v2739_v44 }
 0x3ba   :  { %2462 = vmatpush3.bf16.msra.mxu1 %v2599_v55 }
 0x403   :  { %v750_v46 = vpop.xlane.xlu0 %749 }
 0x404   :  { %v753_v51 = vmul.f32 1e-06, %v750_v46 }
 0x438   :  { %v752_v48 = vpop.xlane.xlu1 %751 }
 0x456   :  { %v507_v16 = vpop.f32.mrb[12].mxu1 }
 0x457   :  { %v2435_v19 = vpop.f32.mrb[13].mxu1  ;;  %v514_v10 = vmul.f32 %v507_v16, %v3044_v24 }
 0x458   :  { %v510_v20 = vpop.f32.mrb[14].mxu1 }
 0x459   :  { %v515_v14 = vmul.f32 %v510_v20, %v3049_v17  ;;  %v2436_v50 = vpop.f32.mrb[15].mxu1  ;;  %v563_v35 = vsel %vm518_vm2, %v514_v10, 0.0 }
 0x45b   :  { %v516_v21 = vpack.c.bf16 %v515_v14, %v514_v10  ;;  %v566_v36 = vsel %vm518_vm2, %v515_v14, 0.0 }
 0x45d   :  { %2440 = vmatmul.mubr.msk.bf16.vlgmr.msra.gmra.mrb[0].mxu0 %vm518_vm2, %v516_v21 }
 0x45e   :  { %2450 = vmatpush3.bf16.msra.mxu0 %v697_v22  ;;  %2451 = vmatprep.mubr.msk.bf16.mxu0 %vm2743_vm1, %v2739_v44 }
 0x45f   :  { %2467 = vmatprep.subr.bf16.mxu0 %v2739_v44 }
 0x480   :  { %v685_v23 = vpop.f32.mrb[16].mxu1 }
 0x481   :  { %v692_v56 = vmul.f32 %v685_v23, %v3044_v24  ;;  %v2447_v25 = vpop.f32.mrb[17].mxu1 }
 0x482   :  { %v688_v26 = vpop.f32.mrb[18].mxu1 }
 0x483   :  { %v693_v30 = vmul.f32 %v688_v26, %v3049_v17  ;;  %v2448_v31 = vpop.f32.mrb[19].mxu1  ;;  %v743_v32 = vsel %vm518_vm2, %v692_v56, 0.0 }
 0x484   :  { %744 = vadd.xlane.f32.xlu0 %v743_v32  ;;  %v2266_v31 = vld [vmem:[%s3486_s8] ss:$0 sm:$0xff] }
 0x485   :  { %v694_v33 = vpack.c.bf16 %v693_v30, %v692_v56  ;;  %v746_v34 = vsel %vm518_vm2, %v693_v30, 0.0  ;;  %v381_v32 = vadd.f32 %v2266_v31, %v2838_v0 }
 0x487   :  { %2452 = vmatmul.mubr.msk.bf16.vlgmr.msra.gmra.mrb[4].mxu0 %vm518_vm2, %v694_v33  ;;  %v382_v33 = vadd.f32 %v2266_v31, %v2843_v1 }
 0x488   :  { %747 = vadd.xlane.f32.xlu0 %v746_v34  ;;  %2471 = vmatprep.mubr.msk.bf16.mxu0 %vm2743_vm1, %v2739_v44 }
 0x48c   :  { %569 = vadd.xlane.f32.xlu0 %v443_v63 }
 0x490   :  { %571 = vadd.xlane.f32.xlu0 %v444_v58  ;;  %v754_v58 = vmul.f32 1e-06, %v752_v48 }
 0x494   :  { %564 = vadd.xlane.f32.xlu0 %v563_v35 }
 0x498   :  { %567 = vadd.xlane.f32.xlu0 %v566_v36 }
 0x511   :  { %v745_v28 = vpop.xlane.xlu0 %744 }
 0x512   :  { %v755_v62 = vadd.f32 %v753_v51, %v745_v28 }
 0x514   :  { %2662 = vrcp.f32 %v755_v62  ;;  %v2600_v62 = vld [vmem:[%s3489_s11] sm:$0xff]  }
 0x515   :  { %v748_v52 = vpop.xlane.xlu0 %747  ;;  %2468 = vmatpush3.bf16.msra.mxu0 %v2600_v62 }
 0x516   :  { %v756_v63 = vadd.f32 %v754_v58, %v748_v52  ;;  %2469 = vmatprep.subr.bf16.mxu0 %v2739_v44 }
 0x518   :  { %2664 = vrcp.f32 %v756_v63  ;;  %v2601_v63 = vld [vmem:[%s3489_s11 + $0x8] sm:$0xff]  }
 0x519   :  { %v570_v9 = vpop.xlane.xlu0 %569  ;;  %2470 = vmatpush3.bf16.msra.mxu0 %v2601_v63 }
 0x51a   :  { %v573_v16 = vmul.f32 1e-06, %v570_v9  ;;  %2475 = vmatprep.subr.bf16.mxu0 %v2739_v44 }
 0x51d   :  { %v572_v11 = vpop.xlane.xlu0 %571 }
 0x51e   :  { %v2663_v3 = vpop.eup %2662  ;;  %v574_v15 = vmul.f32 1e-06, %v572_v11 }
 0x521   :  { %v565_v4 = vpop.xlane.xlu0 %564 }
 0x522   :  { %v2665_v6 = vpop.eup %2664  ;;  %v575_v20 = vadd.f32 %v573_v16, %v565_v4  ;;  %v2275_v4 = vld [vmem:[%s3488_s10] ss:$0 sm:$0xff] }
 0x525   :  { %v568_v13 = vpop.xlane.xlu0 %567 }
 0x526   :  { %v576_v19 = vadd.f32 %v574_v15, %v568_v13 }
 0x528   :  { %2666 = vrcp.f32 %v576_v19 }
 0x529   :  { %2668 = vrcp.f32 %v575_v20  ;;  %v2602_v20 = vld [vmem:[%s3491_s13] sm:$0xff]  }
 0x530   :  { %v556_v41 = vpop.f32.mrb[0].mxu0 }
 0x531   :  { %v2441_v42 = vpop.f32.mrb[1].mxu0 }
 0x532   :  { %v559_v43 = vpop.f32.mrb[2].mxu0  ;;  %v2667_v10 = vpop.eup %2666 }
 0x533   :  { %v2442_v45 = vpop.f32.mrb[3].mxu0  ;;  %v2669_v14 = vpop.eup %2668  ;;  %v580_v22 = vmul.f32 %v2667_v10, %v559_v43  ;;  %v2603_v10 = vld [vmem:[%s3491_s13 + $0x8] sm:$0xff]  }
 0x534   :  { %v579_v21 = vmul.f32 %v2669_v14, %v556_v41  ;;  %v2604_v14 = vld [vmem:[%s3491_s13 + $0x10] sm:$0xff]  }
 0x55a   :  { %v736_v2 = vpop.f32.mrb[4].mxu0 }
 0x55b   :  { %v2453_v60 = vpop.f32.mrb[5].mxu0  ;;  %v759_v5 = vmul.f32 %v2663_v3, %v736_v2 }
 0x55c   :  { %v739_v38 = vpop.f32.mrb[6].mxu0 }
 0x55d   :  { %v760_v7 = vmul.f32 %v2665_v6, %v739_v38  ;;  %v2454_v8 = vpop.f32.mrb[7].mxu0 }
 0x55e   :  { %v2274_v8 = vld [vmem:[%s3487_s9] ss:$0 sm:$0xff] }
 0x55f   :  { %v2568_v39 = vpack.i.bf16 %v760_v7, %v759_v5 }
 0x561   :  { %2569 = vrot.lane.b32.xlu0 %v2568_v39, %s2742_s18 }
 0x5d3   :  { %v2570_v50 = vpop.permute.xlu0 %2569 }
 0x5d4   :  { %v2572_v23 = vunpack.i.h.bf16 %v2570_v50  ;;  %v2571_v56 = vunpack.i.l.bf16 %v2570_v50  ;;  %v2605_v50 = vld [vmem:[%s3491_s13 + $0x18] sm:$0xff]  }
 0x5d6   :  { %v770_v25 = vsel %vm65_vm0, %v580_v22, %v2572_v23  ;;  %v769_v26 = vsel %vm65_vm0, %v579_v21, %v2571_v56  ;;  %v2606_v21 = vld [vmem:[%s3491_s13 + $0x20] sm:$0xff]   ;;  %v2607_v22 = vld [vmem:[%s3491_s13 + $0x28] sm:$0xff]   ;;  %v2608_v23 = vld [vmem:[%s3491_s13 + $0x30] sm:$0xff]  }
 0x5d7   :  { %v771_v30 = vpack.c.bf16 %v770_v25, %v769_v26  ;;  %v2609_v56 = vld [vmem:[%s3491_s13 + $0x38] sm:$0xff]   ;;  %v2276_v25 = vld [vmem:[%s3490_s12] ss:$0 sm:$0xff] }
 0x5d9   :  { %2464 = vmatmul.mubr.msk.bf16.vlgmr.msra.gmra.mrb[20].mxu1 %vm804_vm3, %v771_v30 }
 0x5da   :  { %1286 = vmatprep.mubr.bf16.mxu1 %v2738_v18 }
 0x6ac   :  { %v842_v34 = vpop.f32.mrb[20].mxu1 }
 0x6ad   :  { %v3091_v35 = vadd.f32 %v842_v34, %v381_v32  ;;  %v2465_v36 = vpop.f32.mrb[21].mxu1 }
 0x6ae   :  { %v845_v37 = vpop.f32.mrb[22].mxu1 }
 0x6af   :  { %v3093_v61 = vadd.f32 %v845_v37, %v382_v33  ;;  %v2466_v40 = vpop.f32.mrb[23].mxu1  ;;  %v851_v41 = vsel %vm65_vm0, %v3091_v35, 0.0 }
 0x6b0   :  { %852 = vadd.xlane.f32.xlu1 %v851_v41 }
 0x6b1   :  { %v854_v42 = vsel %vm65_vm0, %v3093_v61, 0.0 }
 0x6b4   :  { %855 = vadd.xlane.f32.xlu1 %v854_v42 }
 0x73d   :  { %v853_v43 = vpop.xlane.xlu1 %852 }
 0x73e   :  { %v857_v0 = vmul.f32 0.03125, %v853_v43 }
 0x740   :  { %v859_v1 = vsub.f32 %v3091_v35, %v857_v0 }
 0x741   :  { %v856_v45 = vpop.xlane.xlu1 %855 }
 0x742   :  { %v858_v46 = vmul.f32 0.03125, %v856_v45  ;;  %v861_v28 = vmul.f32 %v859_v1, %v859_v1 }
 0x744   :  { %v860_v48 = vsub.f32 %v3093_v61, %v858_v46  ;;  %v863_v51 = vsel %vm65_vm0, %v861_v28, 0.0 }
 0x745   :  { %864 = vadd.xlane.f32.xlu1 %v863_v51 }
 0x746   :  { %v862_v52 = vmul.f32 %v860_v48, %v860_v48 }
 0x748   :  { %v866_v58 = vsel %vm65_vm0, %v862_v52, 0.0 }
 0x749   :  { %867 = vadd.xlane.f32.xlu0 %v866_v58 }
 0x7d2   :  { %v865_v55 = vpop.xlane.xlu1 %864 }
 0x7d3   :  { %v869_v2 = vmul.f32 0.03125, %v865_v55 }
 0x7d5   :  { %v871_v3 = vadd.f32 1e-05, %v869_v2 }
 0x7d6   :  { %v868_v60 = vpop.xlane.xlu0 %867 }
 0x7d7   :  { %2670 = vrsqrt.f32 %v871_v3  ;;  %v870_v6 = vmul.f32 0.03125, %v868_v60  ;;  %v2288_v60 = vld [vmem:[%s3492_s14] ss:$0 sm:$0xff] }
 0x7d9   :  { %v872_v38 = vadd.f32 1e-05, %v870_v6 }
 0x7db   :  { %2672 = vrsqrt.f32 %v872_v38 }
 0x7e1   :  { %v2671_v5 = vpop.eup %2670 }
 0x7e2   :  { %v875_v7 = vmul.f32 %v2671_v5, %v859_v1 }
 0x7e4   :  { %v884_v9 = vmul.f32 %v2274_v8, %v875_v7 }
 0x7e5   :  { %v2673_v39 = vpop.eup %2672 }
 0x7e6   :  { %v876_v11 = vmul.f32 %v2673_v39, %v860_v48  ;;  %v893_v15 = vadd.f32 %v2275_v4, %v884_v9 }
 0x7e8   :  { %v885_v13 = vmul.f32 %v2274_v8, %v876_v11 }
 0x7ea   :  { %v894_v16 = vadd.f32 %v2275_v4, %v885_v13 }
 0x7ec   :  { %v895_v19 = vpack.c.bf16 %v894_v16, %v893_v15 }
 0x7ee   :  { %2472 = vmatmul.mubr.msk.bf16.vlgmr.msra.gmra.mrb[8].mxu0 %vm65_vm0, %v895_v19 }
 0x7ef   :  { %2491 = vmatprep.mubr.msk.bf16.mxu0 %vm2743_vm1, %v2739_v44  ;;  %2476 = vmatpush3.bf16.msra.mxu0 %v2602_v20 }
 0x7f0   :  { %2477 = vmatprep.subr.bf16.mxu0 %v2739_v44 }
 0x7f3   :  { %2478 = vmatpush3.bf16.msra.mxu0 %v2603_v10 }
 0x7f4   :  { %2479 = vmatprep.subr.bf16.mxu0 %v2739_v44 }
 0x7f7   :  { %2480 = vmatpush3.bf16.msra.mxu0 %v2604_v14 }
 0x7f8   :  { %2481 = vmatprep.subr.bf16.mxu0 %v2739_v44 }
 0x7fb   :  { %2482 = vmatpush3.bf16.msra.mxu0 %v2605_v50 }
 0x7fc   :  { %2483 = vmatprep.subr.bf16.mxu0 %v2739_v44 }
 0x7ff   :  { %2484 = vmatpush3.bf16.msra.mxu0 %v2606_v21  ;;  %v2612_v21 = vld [vmem:[%s3483_s5 + $0x64] ss:$24 sps:$4 sm:$0xff]  }
 0x800   :  { %2485 = vmatprep.subr.bf16.mxu0 %v2739_v44  ;;  %1254 = vmatprep.subr.bf16.mxu1 %v2612_v21 }
 0x803   :  { %2486 = vmatpush3.bf16.msra.mxu0 %v2607_v22  ;;  %v2610_v22 = vld [vmem:[%s3483_s5 + $0x60] ss:$24 sps:$4 sm:$0xff]  }
 0x804   :  { %2487 = vmatprep.subr.bf16.mxu0 %v2739_v44  ;;  %1255 = vmatpush1.bf16.msra.mxu1 %v2610_v22 }
 0x807   :  { %2488 = vmatpush3.bf16.msra.mxu0 %v2608_v23  ;;  %v2613_v23 = vld [vmem:[%s3483_s5 + $0x90] ss:$24 sps:$4 sm:$0xff]  }
 0x808   :  { %2489 = vmatprep.subr.bf16.mxu0 %v2739_v44 }
 0x80b   :  { %2490 = vmatpush3.bf16.msra.mxu0 %v2609_v56  ;;  %v2615_v56 = vld [vmem:[%s3483_s5 + $0x94] ss:$24 sps:$4 sm:$0xff]  }
 0x80c   :  { %2501 = vmatprep.subr.bf16.mxu0 %v2739_v44  ;;  %1256 = vmatprep.subr.bf16.mxu1 %v2615_v56 }
 0x80d   :  { %1257 = vmatpush1.bf16.msra.mxu1 %v2613_v23 }
 0x8c1   :  { %v956_v26 = vpop.f32.mrb[8].mxu0 }
 0x8c2   :  { %v957_v30 = vadd.f32 %v2276_v25, %v956_v26  ;;  %v2473_v31 = vpop.f32.mrb[9].mxu0 }
 0x8c3   :  { %v959_v32 = vpop.f32.mrb[10].mxu0 }
 0x8c4   :  { %v965_v33 = vmul.f32 0.044715, %v957_v30  ;;  %v960_v34 = vadd.f32 %v2276_v25, %v959_v32  ;;  %v2474_v36 = vpop.f32.mrb[11].mxu0  ;;  %v963_v52 = vmul.f32 0.5, %v957_v30  ;;  %v2618_v25 = vld [vmem:[%s3483_s5 + $0x6c] ss:$24 sps:$4 sm:$0xff]  }
 0x8c5   :  { %1297 = vmatprep.subr.bf16.mxu1 %v2618_v25 }
 0x8c6   :  { %v967_v37 = vmul.f32 %v965_v33, %v957_v30  ;;  %v966_v40 = vmul.f32 0.044715, %v960_v34  ;;  %v964_v58 = vmul.f32 0.5, %v960_v34 }
 0x8c8   :  { %v969_v41 = vmul.f32 %v967_v37, %v957_v30  ;;  %v968_v42 = vmul.f32 %v966_v40, %v960_v34  ;;  %v2290_v40 = vld [vmem:[%s3481_s3 + $0x1] ss:$0 sm:$0xff] }
 0x8ca   :  { %v971_v43 = vadd.f32 %v969_v41, %v957_v30  ;;  %v970_v0 = vmul.f32 %v968_v42, %v960_v34 }
 0x8cc   :  { %v973_v1 = vmul.f32 0.7978846, %v971_v43  ;;  %v972_v45 = vadd.f32 %v970_v0, %v960_v34  ;;  %v2292_v0 = vld [vmem:[%s3482_s4 + $0x1] ss:$0 sm:$0xff] }
 0x8ce   :  { %2674 = vtanh.f32 %v973_v1  ;;  %v974_v46 = vmul.f32 0.7978846, %v972_v45 }
 0x8d0   :  { %2676 = vtanh.f32 %v974_v46 }
 0x8d8   :  { %v2675_v28 = vpop.eup %2674 }
 0x8d9   :  { %v977_v48 = vadd.f32 1.0, %v2675_v28  ;;  %v2616_v28 = vld [vmem:[%s3483_s5 + $0x68] ss:$24 sps:$4 sm:$0xff]  }
 0x8da   :  { %v2677_v51 = vpop.eup %2676 }
 0x8db   :  { %v978_v62 = vadd.f32 1.0, %v2677_v51  ;;  %v979_v63 = vmul.f32 %v977_v48, %v963_v52  ;;  %v2621_v51 = vld [vmem:[%s3483_s5 + $0x9c] ss:$24 sps:$4 sm:$0xff]   ;;  %v2619_v52 = vld [vmem:[%s3483_s5 + $0x98] ss:$24 sps:$4 sm:$0xff]  }
 0x8dd   :  { %v980_v55 = vmul.f32 %v978_v62, %v964_v58  ;;  %v2624_v58 = vld [vmem:[%s3483_s5 + $0x74] ss:$24 sps:$4 sm:$0xff]   ;;  %v2622_v62 = vld [vmem:[%s3483_s5 + $0x70] ss:$24 sps:$4 sm:$0xff]  }
 0x8df   :  { %v981_v2 = vpack.c.bf16 %v980_v55, %v979_v63  ;;  %v2627_v63 = vld [vmem:[%s3483_s5 + $0xa4] ss:$24 sps:$4 sm:$0xff]   ;;  %v2625_v55 = vld [vmem:[%s3483_s5 + $0xa0] ss:$24 sps:$4 sm:$0xff]  }
 0x8e1   :  { %2492 = vmatmul.mubr.bf16.vlgmr.msra.gmra.mrb[12].mxu0 %v981_v2  ;;  %v3227_v2 = vld [vmem:[%s3484_s6 + $0x6] sm:$0x3f] }
 0x8e2   :  { %2503 = vmatprep.mubr.msk.bf16.mxu0 %vm2743_vm1, %v2739_v44  ;;  %v1180_v22 = vrot.slane %v3227_v2, %v144_v12  ;;  %v1184_v12 = vrot.slane %v3227_v2, %v148_v27 }
 0x9b4   :  { %v1080_v3 = vpop.f32.mrb[12].mxu0 }
 0x9b5   :  { %v1087_v6 = vadd.f32 %v1080_v3, %v3091_v35  ;;  %v2493_v38 = vpop.f32.mrb[13].mxu0  ;;  %v1164_v3 = vrot.slane %v3227_v2, %v2914_v49  ;;  %v1172_v49 = vrot.slane %v3227_v2, %v136_v57 }
 0x9b6   :  { %v1083_v5 = vpop.f32.mrb[14].mxu0 }
 0x9b7   :  { %v3161_v7 = vadd.f32 %v2288_v60, %v1087_v6  ;;  %v1088_v8 = vadd.f32 %v1083_v5, %v3093_v61  ;;  %v2494_v39 = vpop.f32.mrb[15].mxu0 }
 0x9b9   :  { %v3164_v9 = vadd.f32 %v2288_v60, %v1088_v8  ;;  %v1098_v11 = vsel %vm65_vm0, %v3161_v7, 0.0 }
 0x9ba   :  { %1099 = vadd.xlane.f32.xlu1 %v1098_v11 }
 0x9bb   :  { %v1101_v4 = vsel %vm65_vm0, %v3164_v9, 0.0 }
 0x9be   :  { %1102 = vadd.xlane.f32.xlu1 %v1101_v4  ;;  %v1176_v4 = vrot.slane %v3227_v2, %v140_v59 }
 0xa47   :  { %v1100_v13 = vpop.xlane.xlu1 %1099 }
 0xa48   :  { %v1104_v15 = vmul.f32 0.03125, %v1100_v13 }
 0xa4a   :  { %v1106_v35 = vsub.f32 %v3161_v7, %v1104_v15 }
 0xa4b   :  { %v1103_v16 = vpop.xlane.xlu1 %1102 }
 0xa4c   :  { %v1105_v19 = vmul.f32 0.03125, %v1103_v16  ;;  %v1108_v20 = vmul.f32 %v1106_v35, %v1106_v35 }
 0xa4e   :  { %v1107_v61 = vsub.f32 %v3164_v9, %v1105_v19  ;;  %v1110_v10 = vsel %vm65_vm0, %v1108_v20, 0.0 }
 0xa4f   :  { %1111 = vadd.xlane.f32.xlu1 %v1110_v10 }
 0xa50   :  { %v1109_v14 = vmul.f32 %v1107_v61, %v1107_v61 }
 0xa52   :  { %v1113_v50 = vsel %vm65_vm0, %v1109_v14, 0.0 }
 0xa53   :  { %1114 = vadd.xlane.f32.xlu1 %v1113_v50 }
 0xadc   :  { %v1112_v26 = vpop.xlane.xlu1 %1111 }
 0xadd   :  { %v1116_v30 = vmul.f32 0.03125, %v1112_v26 }
 0xadf   :  { %v1118_v31 = vadd.f32 1e-05, %v1116_v30 }
 0xae0   :  { %v1115_v32 = vpop.xlane.xlu1 %1114 }
 0xae1   :  { %2678 = vrsqrt.f32 %v1118_v31  ;;  %v1117_v33 = vmul.f32 0.03125, %v1115_v32 }
 0xae3   :  { %v1119_v34 = vadd.f32 1e-05, %v1117_v33 }
 0xae5   :  { %2680 = vrsqrt.f32 %v1119_v34 }
 0xaeb   :  { %v2679_v36 = vpop.eup %2678 }
 0xaec   :  { %v1122_v37 = vmul.f32 %v2679_v36, %v1106_v35 }
 0xaee   :  { %v1132_v42 = vmul.f32 %v2290_v40, %v1122_v37 }
 0xaef   :  { %v2681_v41 = vpop.eup %2680 }
 0xaf0   :  { %v1123_v43 = vmul.f32 %v2681_v41, %v1107_v61  ;;  %v1142_v45 = vadd.f32 %v2292_v0, %v1132_v42 }
 0xaf2   :  { %v1133_v1 = vmul.f32 %v2290_v40, %v1123_v43 }
 0xaf4   :  { %v1143_v46 = vadd.f32 %v2292_v0, %v1133_v1 }
 0xaf6   :  { %v1144_v48 = vpack.c.bf16 %v1143_v46, %v1142_v45 }
 0xaf8   :  { %2318 = vmatmul.mubr.msk.bf16.vlgmr.msra.gmra.mrb[24].mxu1 %vm65_vm0, %v1144_v48 }
 0xaf9   :  { %1298 = vmatpush1.bf16.msra.mxu1 %v2616_v28  ;;  %1329 = vmatprep.mubr.bf16.mxu1 %v2738_v18 }
 0xafa   :  { %1299 = vmatprep.subr.bf16.mxu1 %v2621_v51 }
 0xafd   :  { %1300 = vmatpush1.bf16.msra.mxu1 %v2619_v52 }
 0xafe   :  { %1340 = vmatprep.subr.bf16.mxu1 %v2624_v58 }
 0xb00   :  { %2319 = vmatmul.mubr.msk.bf16.vlgmr.msra.gmra.mrb[28].mxu1 %vm65_vm0, %v1144_v48 }
 0xb01   :  { %1341 = vmatpush1.bf16.msra.mxu1 %v2622_v62  ;;  %1372 = vmatprep.mubr.bf16.mxu1 %v2738_v18 }
 0xb02   :  { %1342 = vmatprep.subr.bf16.mxu1 %v2627_v63 }
 0xb05   :  { %1343 = vmatpush1.bf16.msra.mxu1 %v2625_v55 }
 0xb06   :  { %2495 = vmatprep.subr.bf16.mxu1 %v2739_v44 }
 0xb08   :  { %2320 = vmatmul.mubr.msk.bf16.vlgmr.msra.gmra.mrb[32].mxu1 %vm65_vm0, %v1144_v48 }
 0xb09   :  { %2497 = vmatprep.mubr.msk.bf16.mxu1 %vm2743_vm1, %v2739_v44 }
 0xbcb   :  { %v1288_v60 = vpop.f32.mrb[24].mxu1 }
 0xbcc   :  { %v3231_v6 = vadd.f32 %v1288_v60, %v1164_v3  ;;  %v3233_v18 = vpop.f32.mrb[25].mxu1 }
 0xbcd   :  { %v1292_v38 = vpop.f32.mrb[26].mxu1 }
 0xbce   :  { %v3235_v5 = vadd.f32 %v1292_v38, %v1164_v3  ;;  %v3237_v8 = vpop.f32.mrb[27].mxu1  ;;  %v1443_v39 = vadd.f32 %v3231_v6, %v2924_v53 }
 0xbd0   :  { %1445 = vmax.xlane.f32.xlu0 %v1443_v39  ;;  %v1444_v11 = vadd.f32 %v3235_v5, %v2924_v53 }
 0xbd2   :  { %1447 = vmax.xlane.f32.xlu1 %v1444_v11 }
 0xbd3   :  { %v1331_v13 = vpop.f32.mrb[28].mxu1 }
 0xbd4   :  { %v3249_v15 = vadd.f32 %v1331_v13, %v1172_v49  ;;  %v1333_v35 = vpop.f32.mrb[29].mxu1 }
 0xbd5   :  { %v3251_v16 = vadd.f32 %v1333_v35, %v1176_v4  ;;  %v1335_v19 = vpop.f32.mrb[30].mxu1  ;;  %v1168_v35 = vrot.slane %v3227_v2, %v132_v54 }
 0xbd6   :  { %v1383_v20 = vadd.f32 %v3249_v15, %v2924_v53  ;;  %v3255_v61 = vadd.f32 %v1335_v19, %v1172_v49  ;;  %v1337_v10 = vpop.f32.mrb[31].mxu1 }
 0xbd7   :  { %v1384_v57 = vadd.f32 %v3251_v16, %v2924_v53  ;;  %v3259_v14 = vadd.f32 %v1337_v10, %v1176_v4  ;;  %v1291_v10 = vadd.f32 %v3233_v18, %v1168_v35  ;;  %v3295_v47 = vadd.f32 %v3237_v8, %v1168_v35 }
 0xbd8   :  { %v1385_v59 = vadd.f32 %v3255_v61, %v2924_v53 }
 0xbd9   :  { %v1386_v50 = vadd.f32 %v3259_v14, %v2924_v53  ;;  %v1387_v21 = vmax.f32 %v1383_v20, %v1384_v57  ;;  %v1631_v54 = vadd.f32 %v3295_v47, %v2924_v53 }
 0xbdb   :  { %v1374_v23 = vpop.f32.mrb[32].mxu1  ;;  %1388 = vmax.xlane.f32.xlu1 %v1387_v21  ;;  %v1390_v26 = vmax.f32 %v1385_v59, %v1386_v50  ;;  %v1630_v21 = vadd.f32 %v1291_v10, %v2924_v53 }
 0xbdc   :  { %v1376_v56 = vpop.f32.mrb[33].mxu1  ;;  %v1375_v30 = vadd.f32 %v1374_v23, %v1180_v22 }
 0xbdd   :  { %v1378_v25 = vpop.f32.mrb[34].mxu1  ;;  %v1377_v37 = vadd.f32 %v1376_v56, %v1184_v12 }
 0xbde   :  { %v1379_v31 = vadd.f32 %v1378_v25, %v1180_v22  ;;  %v1380_v32 = vpop.f32.mrb[35].mxu1  ;;  %v1415_v36 = vmul.f32 %v1375_v30, %v1375_v30 }
 0xbdf   :  { %1391 = vmax.xlane.f32.xlu1 %v1390_v26  ;;  %v1433_v40 = vmul.f32 %v1377_v37, %v1377_v37  ;;  %v1381_v41 = vadd.f32 %v1380_v32, %v1184_v12 }
 0xbe0   :  { %v1537_v33 = vpack.c.bf16 %v1379_v31, %v1375_v30  ;;  %v1416_v34 = vmul.f32 %v1379_v31, %v1379_v31 }
 0xbe1   :  { %v1434_v42 = vmul.f32 %v1381_v41, %v1381_v41  ;;  %v1435_v0 = vsel %vm65_vm0, %v1433_v40, 0.0 }
 0xbe2   :  { %2502 = vmatpush3.bf16.msra.mxu0 %v1537_v33 }
 0xbe3   :  { %2513 = vmatprep.subr.bf16.mxu0 %v2739_v44  ;;  %v1438_v43 = vsel %vm65_vm0, %v1434_v42, 0.0 }
 0xbe6   :  { %1421 = vrot.lane.b32.xlu0 %v1416_v34, %s2741_s30 }
 0xbea   :  { %1602 = vrot.lane.b32.xlu0 %v1416_v34, %s2742_s18 }
 0xbf0   :  { %1419 = vrot.lane.b32.xlu1 %v1415_v36, %s2741_s30 }
 0xbf4   :  { %1600 = vrot.lane.b32.xlu1 %v1415_v36, %s2742_s18 }
 0xbf8   :  { %1616 = vrot.lane.b32.xlu1 %v1433_v40, %s2740_s2 }
 0xc09   :  { %1439 = vadd.xlane.f32.xlu0 %v1438_v43 }
 0xc1c   :  { %1436 = vadd.xlane.f32.xlu1 %v1435_v0 }
 0xc2d   :  { %1618 = vrot.lane.b32.xlu1 %v1434_v42, %s2740_s2 }
 0xc5d   :  { %v3280_v46 = vpop.xlane.xlu0 %1445 }
 0xc5f   :  { %v1448_v1 = vpop.xlane.xlu1 %1447 }
 0xc61   :  { %v1422_v51 = vpop.permute.xlu0 %1421 }
 0xc62   :  { %v1428_v55 = vsel %vm65_vm0, %v1422_v51, 0.0 }
 0xc65   :  { %v1603_v3 = vpop.permute.xlu0 %1602 }
 0xc66   :  { %v1609_v60 = vsel %vm65_vm0, %v1603_v3, 0.0 }
 0xc68   :  { %v1389_v27 = vpop.xlane.xlu1 %1388 }
 0xc69   :  { %v1393_v38 = vrot.slane %v1389_v27, 4 }
 0xc6b   :  { %v1394_v39 = vmax.f32 %v1389_v27, %v1393_v38 }
 0xc6c   :  { %v1392_v45 = vpop.xlane.xlu1 %1391 }
 0xc6d   :  { %v1395_v11 = vrot.slane %v1394_v39, 2  ;;  %v1399_v20 = vrot.slane %v1392_v45, 4 }
 0xc6f   :  { %v1396_v49 = vmax.f32 %v1394_v39, %v1395_v11  ;;  %v1400_v59 = vmax.f32 %v1392_v45, %v1399_v20 }
 0xc70   :  { %v1420_v28 = vpop.permute.xlu1 %1419 }
 0xc71   :  { %v1425_v48 = vsel %vm65_vm0, %v1420_v28, 0.0  ;;  %v1397_v4 = vrot.slane %v1396_v49, 1  ;;  %v1401_v22 = vrot.slane %v1400_v59, 2 }
 0xc72   :  { %1426 = vadd.xlane.f32.xlu0 %v1425_v48 }
 0xc73   :  { %v1398_v13 = vmax.f32 %v1396_v49, %v1397_v4  ;;  %v1402_v23 = vmax.f32 %v1400_v59, %v1401_v22 }
 0xc74   :  { %v1601_v52 = vpop.permute.xlu1 %1600 }
 0xc75   :  { %v1606_v58 = vsel %vm65_vm0, %v1601_v52, 0.0  ;;  %v1403_v56 = vrot.slane %v1402_v23, 1 }
 0xc76   :  { %1607 = vadd.xlane.f32.xlu1 %v1606_v58 }
 0xc77   :  { %v1404_v25 = vmax.f32 %v1402_v23, %v1403_v56 }
 0xc78   :  { %v1617_v62 = vpop.permute.xlu1 %1616 }
 0xc79   :  { %v1622_v63 = vsel %vm65_vm0, %v1617_v62, 0.0 }
 0xc7a   :  { %1623 = vadd.xlane.f32.xlu0 %v1622_v63  ;;  %1429 = vadd.xlane.f32.xlu1 %v1428_v55 }
 0xc7e   :  { %1610 = vadd.xlane.f32.xlu0 %v1609_v60 }
 0xc94   :  { %1469 = vperm.xlu0 %2566, %v1398_v13  }
 0xc96   :  { %v1440_v37 = vpop.xlane.xlu0 %1439 }
 0xc97   :  { %v1442_v62 = vmul.f32 0.5, %v1440_v37 }
 0xca9   :  { %v1437_v19 = vpop.xlane.xlu1 %1436 }
 0xcaa   :  { %v1441_v43 = vmul.f32 0.5, %v1437_v19 }
 0xcad   :  { %v1619_v57 = vpop.permute.xlu1 %1618 }
 0xcae   :  { %v1625_v50 = vsel %vm65_vm0, %v1619_v57, 0.0 }
 0xcaf   :  { %1626 = vadd.xlane.f32.xlu1 %v1625_v50 }
 0xcb3   :  { %1632 = vmax.xlane.f32.xlu0 %v1630_v21 }
 0xcc0   :  { %1474 = vperm.xlu1 %2567, %v1404_v25  }
 0xcc9   :  { %1715 = vrot.lane.b32.xlu0 %v1537_v33, %s2740_s2 }
 0xce4   :  { %1634 = vmax.xlane.f32.xlu1 %v1631_v54 }
 0xcff   :  { %v1427_v40 = vpop.xlane.xlu0 %1426 }
 0xd03   :  { %v1608_v2 = vpop.xlane.xlu1 %1607 }
 0xd04   :  { %v1612_v63 = vmul.f32 0.5, %v1608_v2 }
 0xd06   :  { %v1636_v11 = vsub.f32 %v1291_v10, %v1612_v63 }
 0xd07   :  { %v1430_v18 = vpop.xlane.xlu1 %1429  ;;  %v1624_v41 = vpop.xlane.xlu0 %1623 }
 0xd08   :  { %v1432_v26 = vmul.f32 0.5, %v1430_v18  ;;  %v1628_v45 = vmul.f32 0.5, %v1624_v41 }
 0xd0a   :  { %v1450_v30 = vsub.f32 %v3235_v5, %v1432_v26  ;;  %v1431_v5 = vmul.f32 0.5, %v1427_v40  ;;  %v1652_v51 = vsub.f32 %v3251_v16, %v1628_v45 }
 0xd0b   :  { %v3305_v42 = vpop.xlane.xlu0 %1610 }
 0xd0c   :  { %v1452_v31 = vsub.f32 %v1450_v30, %v1448_v1  ;;  %v1465_v1 = vsub.f32 %v3249_v15, %v1441_v43  ;;  %v1449_v27 = vsub.f32 %v3231_v6, %v1431_v5  ;;  %v1466_v6 = vsub.f32 %v3255_v61, %v1442_v62 }
 0xd0e   :  { %v1454_v32 = vadd.f32 %v1452_v31, %v2924_v53  ;;  %v1451_v48 = vsub.f32 %v1449_v27, %v3280_v46 }
 0xd10   :  { %v1457_v34 = vmul.f32 1.442695, %v1454_v32  ;;  %v1453_v55 = vadd.f32 %v1451_v48, %v2924_v53  ;;  %v1613_v48 = vmul.f32 0.5, %v3305_v42 }
 0xd12   :  { %2682 = vpow2.f32 %v1457_v34  ;;  %v1455_v46 = vmul.f32 1.442695, %v1453_v55 }
 0xd13   :  { %v1470_v0 = vpop.permute.xlu0 %1469 }
 0xd14   :  { %v1477_v28 = vsub.f32 %v1465_v1, %v1470_v0  ;;  %v1654_v58 = vsub.f32 %v1652_v51, %v1470_v0  ;;  %v1637_v51 = vsub.f32 %v3295_v47, %v1613_v48 }
 0xd16   :  { %v1479_v52 = vadd.f32 %v1477_v28, %v2924_v53  ;;  %v1656_v15 = vadd.f32 %v1654_v58, %v2924_v53 }
 0xd18   :  { %v1481_v60 = vmul.f32 1.442695, %v1479_v52  ;;  %v1658_v19 = vmul.f32 1.442695, %v1656_v15 }
 0xd1a   :  { %2684 = vpow2.f32 %v1481_v60 }
 0xd1b   :  { %2686 = vpow2.f32 %v1455_v46 }
 0xd1c   :  { %v2683_v36 = vpop.eup %2682  ;;  %2688 = vpow2.f32 %v1658_v19 }
 0xd1d   :  { %v1460_v12 = vadd.f32 0.0001, %v2683_v36 }
 0xd1f   :  { %v1462_v33 = vmul.f32 0.09534626, %v1460_v12 }
 0xd21   :  { %v3302_v8 = vmul.f32 %v1462_v33, %v3023_v29 }
 0xd23   :  { %1590 = vadd.xlane.f32.xlu0 %v3302_v8 }
 0xd3c   :  { %v1627_v3 = vpop.xlane.xlu1 %1626 }
 0xd3d   :  { %v1629_v38 = vmul.f32 0.5, %v1627_v3 }
 0xd3f   :  { %v1653_v39 = vsub.f32 %v3259_v14, %v1629_v38  ;;  %v2685_v14 = vpop.eup %2684 }
 0xd40   :  { %v1475_v49 = vpop.permute.xlu1 %1474  ;;  %v1633_v16 = vpop.xlane.xlu0 %1632  ;;  %v1485_v10 = vadd.f32 0.0001, %v2685_v14 }
 0xd41   :  { %v1478_v4 = vsub.f32 %v1466_v6, %v1475_v49  ;;  %v1655_v13 = vsub.f32 %v1653_v39, %v1475_v49  ;;  %v1638_v35 = vsub.f32 %v1636_v11, %v1633_v16  ;;  %v2687_v22 = vpop.eup %2686 }
 0xd42   :  { %v2689_v23 = vpop.eup %2688  ;;  %v1487_v54 = vmul.f32 0.09534626, %v1485_v10  ;;  %v1459_v32 = vadd.f32 0.0001, %v2687_v22 }
 0xd43   :  { %v1480_v20 = vadd.f32 %v1478_v4, %v2924_v53  ;;  %v1657_v57 = vadd.f32 %v1655_v13, %v2924_v53  ;;  %v1640_v59 = vadd.f32 %v1638_v35, %v2924_v53  ;;  %v1662_v34 = vadd.f32 0.0001, %v2689_v23 }
 0xd44   :  { %v1489_v12 = vmul.f32 %v1487_v54, %v3023_v29  ;;  %v1461_v43 = vmul.f32 0.09534626, %v1459_v32  ;;  %v1716_v46 = vpop.permute.xlu0 %1715 }
 0xd45   :  { %v1483_v50 = vmul.f32 1.442695, %v1480_v20  ;;  %v1660_v61 = vmul.f32 1.442695, %v1657_v57  ;;  %v1642_v21 = vmul.f32 1.442695, %v1640_v59 }
 0xd46   :  { %v1664_v5 = vmul.f32 0.09534626, %v1662_v34  ;;  %v1463_v1 = vmul.f32 %v1461_v43, %v3023_v29 }
 0xd47   :  { %2690 = vpow2.f32 %v1483_v50  ;;  %v2629_v50 = vld [vmem:[%s3485_s7 + $0x28] sm:$0xff]  }
 0xd48   :  { %2692 = vpow2.f32 %v1660_v61  ;;  %v1666_v27 = vmul.f32 %v1664_v5, %v3023_v29  ;;  %v1491_v45 = vpack.c.bf16 %v3302_v8, %v1463_v1  ;;  %v2630_v61 = vld [vmem:[%s3485_s7 + $0x30] sm:$0xff]  }
 0xd49   :  { %2694 = vpow2.f32 %v1642_v21 }
 0xd51   :  { %v2691_v56 = vpop.eup %2690 }
 0xd52   :  { %v2693_v25 = vpop.eup %2692  ;;  %v1486_v2 = vadd.f32 0.0001, %v2691_v56 }
 0xd53   :  { %v2695_v18 = vpop.eup %2694  ;;  %v1663_v30 = vadd.f32 0.0001, %v2693_v25 }
 0xd54   :  { %v1488_v26 = vmul.f32 0.09534626, %v1486_v2  ;;  %v1646_v31 = vadd.f32 0.0001, %v2695_v18 }
 0xd55   :  { %v1665_v37 = vmul.f32 0.09534626, %v1663_v30 }
 0xd56   :  { %v1648_v36 = vmul.f32 0.09534626, %v1646_v31  ;;  %v1490_v33 = vmul.f32 %v1488_v26, %v3023_v29  ;;  %v2631_v31 = vld [vmem:[%s3485_s7 + $0x38] sm:$0xff]  }
 0xd57   :  { %v1667_v0 = vmul.f32 %v1665_v37, %v3023_v29 }
 0xd58   :  { %v1650_v40 = vmul.f32 %v1648_v36, %v3023_v29  ;;  %v1492_v41 = vpack.c.bf16 %v1490_v33, %v1489_v12 }
 0xd59   :  { %v1669_v28 = vpack.c.bf16 %v1667_v0, %v1666_v27 }
 0xd5a   :  { %1768 = vadd.xlane.f32.xlu1 %v1650_v40  ;;  %2496 = vmatpush3.bf16.xpose.msra.mxu1 %v1492_v41 }
 0xd5b   :  { %2507 = vmatprep.subr.bf16.mxu1 %v2739_v44 }
 0xd61   :  { %2498 = vmatmul.mubr.bf16.vlgmr.msra.gmra.mrb[36].mxu1 %v1491_v45 }
 0xd62   :  { %2508 = vmatpush3.bf16.xpose.msra.mxu1 %v1669_v28  ;;  %2509 = vmatprep.mubr.msk.bf16.mxu1 %vm2743_vm1, %v2739_v44 }
 0xd63   :  { %2519 = vmatprep.subr.bf16.mxu1 %v2739_v44 }
 0xd71   :  { %v1635_v52 = vpop.xlane.xlu1 %1634 }
 0xd72   :  { %v1639_v58 = vsub.f32 %v1637_v51, %v1635_v52 }
 0xd74   :  { %v1641_v62 = vadd.f32 %v1639_v58, %v2924_v53 }
 0xd76   :  { %v1644_v63 = vmul.f32 1.442695, %v1641_v62 }
 0xd78   :  { %2696 = vpow2.f32 %v1644_v63 }
 0xd82   :  { %v2697_v55 = vpop.eup %2696 }
 0xd83   :  { %v1647_v8 = vadd.f32 0.0001, %v2697_v55 }
 0xd85   :  { %v1649_v3 = vmul.f32 0.09534626, %v1647_v8 }
 0xd87   :  { %v1651_v60 = vmul.f32 %v1649_v3, %v3023_v29 }
 0xd89   :  { %1770 = vadd.xlane.f32.xlu1 %v1651_v60  ;;  %v1668_v38 = vpack.c.bf16 %v1651_v60, %v1650_v40 }
 0xd8b   :  { %2510 = vmatmul.mubr.bf16.vlgmr.msra.gmra.mrb[40].mxu1 %v1668_v38 }
 0xd8c   :  { %2527 = vmatprep.mubr.msk.bf16.mxu1 %vm2743_vm1, %v2739_v44 }
 0xde7   :  { %v1769_v23 = vpop.xlane.xlu1 %1768 }
 0xde8   :  { %v1772_v54 = vmul.f32 1e-06, %v1769_v23 }
 0xe16   :  { %v1771_v56 = vpop.xlane.xlu1 %1770 }
 0xe17   :  { %v1773_v18 = vmul.f32 1e-06, %v1771_v56 }
 0xe34   :  { %v1527_v42 = vpop.f32.mrb[36].mxu1 }
 0xe35   :  { %v2499_v15 = vpop.f32.mrb[37].mxu1  ;;  %v1534_v6 = vmul.f32 %v1527_v42, %v3044_v24 }
 0xe36   :  { %v1530_v47 = vpop.f32.mrb[38].mxu1  ;;  %v2322_v15 = vld [vmem:[%s3486_s8 + $0x1] ss:$0 sm:$0xff] }
 0xe37   :  { %v1535_v53 = vmul.f32 %v1530_v47, %v3049_v17  ;;  %v2500_v39 = vpop.f32.mrb[39].mxu1  ;;  %v1413_v47 = vadd.f32 %v2322_v15, %v3161_v7 }
 0xe39   :  { %v1536_v11 = vpack.c.bf16 %v1535_v53, %v1534_v6  ;;  %v1585_v59 = vsel %vm518_vm2, %v1535_v53, 0.0 }
 0xe3b   :  { %2504 = vmatmul.mubr.msk.bf16.vlgmr.msra.gmra.mrb[16].mxu0 %vm518_vm2, %v1536_v11  ;;  %v1414_v11 = vadd.f32 %v2322_v15, %v3164_v9 }
 0xe3c   :  { %2514 = vmatpush3.bf16.msra.mxu0 %v1716_v46  ;;  %2515 = vmatprep.mubr.msk.bf16.mxu0 %vm2743_vm1, %v2739_v44 }
 0xe3d   :  { %2531 = vmatprep.subr.bf16.mxu0 %v2739_v44 }
 0xe5e   :  { %v1704_v29 = vpop.f32.mrb[40].mxu1 }
 0xe5f   :  { %v1711_v49 = vmul.f32 %v1704_v29, %v3044_v24  ;;  %v2511_v16 = vpop.f32.mrb[41].mxu1  ;;  %v1582_v24 = vsel %vm518_vm2, %v1534_v6, 0.0 }
 0xe60   :  { %v1707_v4 = vpop.f32.mrb[42].mxu1 }
 0xe61   :  { %v1712_v13 = vmul.f32 %v1707_v4, %v3049_v17  ;;  %v2512_v35 = vpop.f32.mrb[43].mxu1  ;;  %v1762_v19 = vsel %vm518_vm2, %v1711_v49, 0.0  ;;  %v2628_v17 = vld [vmem:[%s3485_s7 + $0x20] sm:$0xff]  }
 0xe62   :  { %1763 = vadd.xlane.f32.xlu1 %v1762_v19  ;;  %2520 = vmatpush3.bf16.msra.mxu1 %v2628_v17 }
 0xe63   :  { %v1713_v20 = vpack.c.bf16 %v1712_v13, %v1711_v49  ;;  %v1765_v57 = vsel %vm518_vm2, %v1712_v13, 0.0  ;;  %2521 = vmatprep.subr.bf16.mxu1 %v2739_v44 }
 0xe65   :  { %2516 = vmatmul.mubr.msk.bf16.vlgmr.msra.gmra.mrb[20].mxu0 %vm518_vm2, %v1713_v20 }
 0xe66   :  { %1766 = vadd.xlane.f32.xlu1 %v1765_v57  ;;  %2535 = vmatprep.mubr.msk.bf16.mxu0 %vm2743_vm1, %v2739_v44 }
 0xe67   :  { %2522 = vmatpush3.bf16.msra.mxu1 %v2629_v50  ;;  %v2632_v50 = vld [vmem:[%s3489_s11 + $0x10] sm:$0xff]  }
 0xe68   :  { %2523 = vmatprep.subr.bf16.mxu1 %v2739_v44  ;;  %2532 = vmatpush3.bf16.msra.mxu0 %v2632_v50  ;;  %v2377_v50 = vld [vmem:[%s3493_s15 + $0x8] sm:$0xff] }
 0xe69   :  { %2533 = vmatprep.subr.bf16.mxu0 %v2739_v44 }
 0xe6a   :  { %1588 = vadd.xlane.f32.xlu1 %v1463_v1  ;;  %v1591_v1 = vpop.xlane.xlu0 %1590 }
 0xe6b   :  { %2524 = vmatpush3.bf16.msra.mxu1 %v2630_v61  ;;  %v1593_v28 = vmul.f32 1e-06, %v1591_v1  ;;  %v2633_v61 = vld [vmem:[%s3489_s11 + $0x18] sm:$0xff]  }
 0xe6c   :  { %2525 = vmatprep.subr.bf16.mxu1 %v2739_v44  ;;  %2534 = vmatpush3.bf16.msra.mxu0 %v2633_v61  ;;  %v2641_v1 = vld [vmem:[%s3491_s13 + $0x78] sm:$0xff]  }
 0xe6d   :  { %2539 = vmatprep.subr.bf16.mxu0 %v2739_v44 }
 0xe6e   :  { %1583 = vadd.xlane.f32.xlu1 %v1582_v24 }
 0xe6f   :  { %2526 = vmatpush3.bf16.msra.mxu1 %v2631_v31  ;;  %v2341_v31 = vld [vmem:[%s3488_s10 + $0x1] ss:$0 sm:$0xff] }
 0xe72   :  { %1586 = vadd.xlane.f32.xlu1 %v1585_v59 }
 0xeef   :  { %v1764_v25 = vpop.xlane.xlu1 %1763 }
 0xef0   :  { %v1774_v26 = vadd.f32 %v1772_v54, %v1764_v25 }
 0xef2   :  { %2698 = vrcp.f32 %v1774_v26 }
 0xef3   :  { %v1767_v2 = vpop.xlane.xlu1 %1766 }
 0xef4   :  { %v1775_v30 = vadd.f32 %v1773_v18, %v1767_v2  ;;  %v2339_v2 = vld [vmem:[%s3487_s9 + $0x1] ss:$0 sm:$0xff]  ;;  %s2240_s9 = sshll.u32 %s2744_s20, 4  ;;  %s2241_s9 = int_to_ptr.vmem [resolvable:$true] %s2240_s9 }
 0xef5   :  { %s2714_s21 = scalar_lea.vmem %s2241_s9, 32  ;;  %p2719_p1 = scmp.lt.s32.totalorder %s2241_s9, %s2241_s9 }
 0xef6   :  { %2700 = vrcp.f32 %v1775_v30  ;;  %p2715_p0 = scmp.ne.s32.totalorder %s2241_s9, %s2714_s21  ;;  %p2720_p2 = scmp.lt.s32.totalorder %s2714_s21, %s2714_s21 }
 0xef7   :  { %v1589_v5 = vpop.xlane.xlu1 %1588 }
 0xef8   :  { %v1592_v27 = vmul.f32 1e-06, %v1589_v5  ;;  %v2639_v5 = vld [vmem:[%s3491_s13 + $0x68] sm:$0xff]   ;;  %p2721_p3 = por %p2720_p2, %p2719_p1 }
 0xefa   :  { %p2722_p4 = pnand %p2721_p3, %p2715_p0 }
 0xefb   :  { %v1584_v0 = vpop.xlane.xlu1 %1583 }
 0xefc   :  { %v2699_v34 = vpop.eup %2698  ;;  %v1594_v48 = vadd.f32 %v1592_v27, %v1584_v0  ;;  %v2640_v0 = vld [vmem:[%s3491_s13 + $0x70] sm:$0xff]   ;;  %v2347_v27 = vld [vmem:[%s3490_s12 + $0x1] ss:$0 sm:$0xff] }
 0xefe   :  { %2702 = vrcp.f32 %v1594_v48 }
 0xeff   :  { %v1587_v45 = vpop.xlane.xlu1 %1586 }
 0xf00   :  { %v2701_v12 = vpop.eup %2700  ;;  %v1595_v51 = vadd.f32 %v1593_v28, %v1587_v45 }
 0xf02   :  { %2704 = vrcp.f32 %v1595_v51 }
 0xf08   :  { %v2703_v52 = vpop.eup %2702 }
 0xf0c   :  { %v2705_v58 = vpop.eup %2704 }
 0xf0e   :  { %v1575_v21 = vpop.f32.mrb[16].mxu0 }
 0xf0f   :  { %v2505_v14 = vpop.f32.mrb[17].mxu0  ;;  %v1598_v63 = vmul.f32 %v2703_v52, %v1575_v21 }
 0xf10   :  { %v1578_v10 = vpop.f32.mrb[18].mxu0 }
 0xf11   :  { %v2506_v22 = vpop.f32.mrb[19].mxu0  ;;  %v1599_v55 = vmul.f32 %v2705_v58, %v1578_v10 }
 0xf38   :  { %v1755_v32 = vpop.f32.mrb[20].mxu0 }
 0xf39   :  { %v2517_v36 = vpop.f32.mrb[21].mxu0  ;;  %v1778_v37 = vmul.f32 %v2699_v34, %v1755_v32 }
 0xf3a   :  { %v1758_v33 = vpop.f32.mrb[22].mxu0 }
 0xf3b   :  { %v1779_v40 = vmul.f32 %v2701_v12, %v1758_v33  ;;  %v2518_v41 = vpop.f32.mrb[23].mxu0  ;;  %v2634_v33 = vld [vmem:[%s3491_s13 + $0x40] sm:$0xff]  }
 0xf3c   :  { %v2637_v41 = vld [vmem:[%s3491_s13 + $0x58] sm:$0xff]  }
 0xf3d   :  { %v2573_v43 = vpack.i.bf16 %v1779_v40, %v1778_v37  ;;  %v2635_v37 = vld [vmem:[%s3491_s13 + $0x48] sm:$0xff]   ;;  %v2636_v40 = vld [vmem:[%s3491_s13 + $0x50] sm:$0xff]  }
 0xf3f   :  { %2574 = vrot.lane.b32.xlu1 %v2573_v43, %s2742_s18  ;;  %v2638_v43 = vld [vmem:[%s3491_s13 + $0x60] sm:$0xff]  }
 0xfb1   :  { %v2575_v62 = vpop.permute.xlu1 %2574 }
 0xfb2   :  { %v2577_v8 = vunpack.i.h.bf16 %v2575_v62  ;;  %v2576_v3 = vunpack.i.l.bf16 %v2575_v62 }
 0xfb4   :  { %v1788_v60 = vsel %vm65_vm0, %v1598_v63, %v2576_v3  ;;  %v1789_v38 = vsel %vm65_vm0, %v1599_v55, %v2577_v8 }
 0xfb5   :  { %v1790_v42 = vpack.c.bf16 %v1789_v38, %v1788_v60 }
 0xfb7   :  { %2528 = vmatmul.mubr.msk.bf16.vlgmr.msra.gmra.mrb[44].mxu1 %vm804_vm3, %v1790_v42 }
0x108a   :  { %v1861_v6 = vpop.f32.mrb[44].mxu1 }
0x108b   :  { %v3374_v53 = vadd.f32 %v1861_v6, %v1413_v47  ;;  %v2529_v39 = vpop.f32.mrb[45].mxu1 }
0x108c   :  { %v1864_v46 = vpop.f32.mrb[46].mxu1 }
0x108d   :  { %v3377_v29 = vadd.f32 %v1864_v46, %v1414_v11  ;;  %v2530_v49 = vpop.f32.mrb[47].mxu1  ;;  %v1870_v16 = vsel %vm65_vm0, %v3374_v53, 0.0 }
0x108e   :  { %1871 = vadd.xlane.f32.xlu1 %v1870_v16 }
0x108f   :  { %v1873_v4 = vsel %vm65_vm0, %v3377_v29, 0.0 }
0x1090   :  { %1874 = vadd.xlane.f32.xlu0 %v1873_v4 }
0x111b   :  { %v1872_v13 = vpop.xlane.xlu1 %1871 }
0x111c   :  { %v1876_v7 = vmul.f32 0.03125, %v1872_v13 }
0x111d   :  { %v1875_v35 = vpop.xlane.xlu0 %1874 }
0x111e   :  { %v1878_v19 = vsub.f32 %v3374_v53, %v1876_v7  ;;  %v1877_v20 = vmul.f32 0.03125, %v1875_v35  ;;  %v2376_v35 = vld [vmem:[%s3492_s14 + $0x1] ss:$0 sm:$0xff] }
0x1120   :  { %v1879_v9 = vsub.f32 %v3377_v29, %v1877_v20  ;;  %v1880_v57 = vmul.f32 %v1878_v19, %v1878_v19 }
0x1122   :  { %v1882_v24 = vsel %vm65_vm0, %v1880_v57, 0.0  ;;  %v1881_v59 = vmul.f32 %v1879_v9, %v1879_v9  ;;  %v2123_v57 = vld [vmem:[%s3493_s15] sm:$0xff] }
0x1123   :  { %1883 = vadd.xlane.f32.xlu0 %v1882_v24 }
0x1124   :  { %v1885_v17 = vsel %vm65_vm0, %v1881_v59, 0.0 }
0x1127   :  { %1886 = vadd.xlane.f32.xlu0 %v1885_v17 }
0x11b0   :  { %v1884_v21 = vpop.xlane.xlu0 %1883 }
0x11b1   :  { %v1888_v14 = vmul.f32 0.03125, %v1884_v21 }
0x11b3   :  { %v1890_v10 = vadd.f32 1e-05, %v1888_v14 }
0x11b4   :  { %v1887_v22 = vpop.xlane.xlu0 %1886 }
0x11b5   :  { %2706 = vrsqrt.f32 %v1890_v10  ;;  %v1889_v23 = vmul.f32 0.03125, %v1887_v22  ;;  %v2379_v22 = vld [vmem:[%s3493_s15 + $0x18] sm:$0xff] }
0x11b7   :  { %v1891_v56 = vadd.f32 1e-05, %v1889_v23 }
0x11b9   :  { %2708 = vrsqrt.f32 %v1891_v56 }
0x11bf   :  { %v2707_v25 = vpop.eup %2706 }
0x11c0   :  { %v1894_v54 = vmul.f32 %v2707_v25, %v1878_v19 }
0x11c2   :  { %v1904_v26 = vmul.f32 %v2339_v2, %v1894_v54 }
0x11c3   :  { %v2709_v18 = vpop.eup %2708 }
0x11c4   :  { %v1895_v30 = vmul.f32 %v2709_v18, %v1879_v9  ;;  %v1914_v34 = vadd.f32 %v2341_v31, %v1904_v26 }
0x11c6   :  { %v1905_v32 = vmul.f32 %v2339_v2, %v1895_v30 }
0x11c8   :  { %v1915_v36 = vadd.f32 %v2341_v31, %v1905_v32 }
0x11ca   :  { %v1916_v12 = vpack.c.bf16 %v1915_v36, %v1914_v34 }
0x11cc   :  { %2536 = vmatmul.mubr.msk.bf16.vlgmr.msra.gmra.mrb[24].mxu0 %vm65_vm0, %v1916_v12 }
0x11cd   :  { %2555 = vmatprep.mubr.msk.bf16.mxu0 %vm2743_vm1, %v2739_v44  ;;  %2540 = vmatpush3.bf16.msra.mxu0 %v2634_v33 }
0x11ce   :  { %2541 = vmatprep.subr.bf16.mxu0 %v2739_v44 }
0x11d1   :  { %2542 = vmatpush3.bf16.msra.mxu0 %v2635_v37 }
0x11d2   :  { %2543 = vmatprep.subr.bf16.mxu0 %v2739_v44 }
0x11d5   :  { %2544 = vmatpush3.bf16.msra.mxu0 %v2636_v40 }
0x11d6   :  { %2545 = vmatprep.subr.bf16.mxu0 %v2739_v44 }
0x11d9   :  { %2546 = vmatpush3.bf16.msra.mxu0 %v2637_v41 }
0x11da   :  { %2547 = vmatprep.subr.bf16.mxu0 %v2739_v44 }
0x11dd   :  { %2548 = vmatpush3.bf16.msra.mxu0 %v2638_v43 }
0x11de   :  { %2549 = vmatprep.subr.bf16.mxu0 %v2739_v44 }
0x11e1   :  { %2550 = vmatpush3.bf16.msra.mxu0 %v2639_v5 }
0x11e2   :  { %2551 = vmatprep.subr.bf16.mxu0 %v2739_v44 }
0x11e5   :  { %2552 = vmatpush3.bf16.msra.mxu0 %v2640_v0 }
0x11e6   :  { %2553 = vmatprep.subr.bf16.mxu0 %v2739_v44 }
0x11e9   :  { %2554 = vmatpush3.bf16.msra.mxu0 %v2641_v1 }
0x129f   :  { %v1979_v45 = vpop.f32.mrb[24].mxu0 }
0x12a0   :  { %v1980_v28 = vadd.f32 %v2347_v27, %v1979_v45  ;;  %v2537_v48 = vpop.f32.mrb[25].mxu0 }
0x12a1   :  { %v1982_v51 = vpop.f32.mrb[26].mxu0 }
0x12a2   :  { %v1988_v52 = vmul.f32 0.044715, %v1980_v28  ;;  %v1983_v58 = vadd.f32 %v2347_v27, %v1982_v51  ;;  %v2538_v62 = vpop.f32.mrb[27].mxu0  ;;  %v1986_v11 = vmul.f32 0.5, %v1980_v28 }
0x12a4   :  { %v1990_v63 = vmul.f32 %v1988_v52, %v1980_v28  ;;  %v1989_v55 = vmul.f32 0.044715, %v1983_v58  ;;  %v1987_v46 = vmul.f32 0.5, %v1983_v58 }
0x12a6   :  { %v1992_v8 = vmul.f32 %v1990_v63, %v1980_v28  ;;  %v1991_v3 = vmul.f32 %v1989_v55, %v1983_v58 }
0x12a8   :  { %v1994_v60 = vadd.f32 %v1992_v8, %v1980_v28  ;;  %v1993_v38 = vmul.f32 %v1991_v3, %v1983_v58 }
0x12aa   :  { %v1996_v42 = vmul.f32 0.7978846, %v1994_v60  ;;  %v1995_v44 = vadd.f32 %v1993_v38, %v1983_v58 }
0x12ac   :  { %2710 = vtanh.f32 %v1996_v42  ;;  %v1997_v15 = vmul.f32 0.7978846, %v1995_v44 }
0x12ae   :  { %2712 = vtanh.f32 %v1997_v15 }
0x12b6   :  { %v2711_v47 = vpop.eup %2710 }
0x12b7   :  { %v2000_v6 = vadd.f32 1.0, %v2711_v47 }
0x12b8   :  { %v2713_v39 = vpop.eup %2712 }
0x12b9   :  { %v2001_v49 = vadd.f32 1.0, %v2713_v39  ;;  %v2002_v16 = vmul.f32 %v2000_v6, %v1986_v11 }
0x12bb   :  { %v2003_v4 = vmul.f32 %v2001_v49, %v1987_v46 }
0x12bd   :  { %v2004_v13 = vpack.c.bf16 %v2003_v4, %v2002_v16 }
0x12bf   :  { %2556 = vmatmul.mubr.bf16.vlgmr.msra.gmra.mrb[28].mxu0 %v2004_v13 }
0x1392   :  { %v2104_v7 = vpop.f32.mrb[28].mxu0 }
0x1393   :  { %v2111_v19 = vadd.f32 %v2104_v7, %v3374_v53  ;;  %v2557_v20 = vpop.f32.mrb[29].mxu0 }
0x1394   :  { %v2107_v9 = vpop.f32.mrb[30].mxu0 }
0x1395   :  { %v2121_v24 = vadd.f32 %v2376_v35, %v2111_v19  ;;  %v2112_v59 = vadd.f32 %v2107_v9, %v3377_v29  ;;  %v2558_v17 = vpop.f32.mrb[31].mxu0  ;;  %v2378_v29 = vld [vmem:[%s3493_s15 + $0x10] sm:$0xff] }
0x1397   :  { %v2122_v61 = vadd.f32 %v2376_v35, %v2112_v59  ;;  %v2124_v21 = vmul.f32 %v2123_v57, %v2121_v24  ;;  %v2136_v53 = vmul.f32 %v2377_v50, %v2121_v24  ;;  %v2148_v54 = vmul.f32 %v2378_v29, %v2121_v24 }
0x1398   :  { %v2160_v26 = vmul.f32 %v2379_v22, %v2121_v24 }
0x1399   :  { %v2125_v14 = vsel %vm65_vm0, %v2124_v21, 0.0  ;;  %v2186_v10 = vmul.f32 %v2377_v50, %v2122_v61  ;;  %v2206_v56 = vmul.f32 %v2379_v22, %v2122_v61  ;;  %v2137_v25 = vsel %vm65_vm0, %v2136_v53, 0.0 }
0x139a   :  { %2126 = vadd.xlane.f32.xlu0 %v2125_v14  ;;  %v2149_v18 = vsel %vm65_vm0, %v2148_v54, 0.0  ;;  %v2161_v30 = vsel %vm65_vm0, %v2160_v26, 0.0  ;;  %v2176_v31 = vmul.f32 %v2123_v57, %v2122_v61  ;;  %v2196_v34 = vmul.f32 %v2378_v29, %v2122_v61 }
0x139b   :  { %v2187_v23 = vsel %vm65_vm0, %v2186_v10, 0.0  ;;  %v2207_v2 = vsel %vm65_vm0, %v2206_v56, 0.0 }
0x139c   :  { %2188 = vadd.xlane.f32.xlu1 %v2187_v23  ;;  %v2177_v32 = vsel %vm65_vm0, %v2176_v31, 0.0  ;;  %v2197_v36 = vsel %vm65_vm0, %v2196_v34, 0.0  ;;  %v2380_v34 = vld [vmem:[%s3494_s16] ss:$0 sm:$0xff] }
0x139e   :  { %2138 = vadd.xlane.f32.xlu0 %v2137_v25 }
0x13a0   :  { %2208 = vadd.xlane.f32.xlu1 %v2207_v2 }
0x13a2   :  { %2150 = vadd.xlane.f32.xlu0 %v2149_v18 }
0x13a6   :  { %2162 = vadd.xlane.f32.xlu0 %v2161_v30 }
0x13aa   :  { %2178 = vadd.xlane.f32.xlu0 %v2177_v32 }
0x13ae   :  { %2198 = vadd.xlane.f32.xlu0 %v2197_v36 }
0x1427   :  { %v2127_v12 = vpop.xlane.xlu0 %2126 }
0x1428   :  { %v2128_v1 = vrot.slane %v2127_v12, 4 }
0x1429   :  { %v2189_v33 = vpop.xlane.xlu1 %2188 }
0x142a   :  { %v2190_v43 = vrot.slane %v2189_v33, 4  ;;  %v2129_v58 = vadd.f32 %v2128_v1, %v2127_v12 }
0x142b   :  { %v2139_v37 = vpop.xlane.xlu0 %2138 }
0x142c   :  { %v2140_v5 = vrot.slane %v2139_v37, 4  ;;  %v2191_v48 = vadd.f32 %v2190_v43, %v2189_v33  ;;  %v2130_v44 = vrot.slane %v2129_v58, 2 }
0x142d   :  { %v2209_v41 = vpop.xlane.xlu1 %2208 }
0x142e   :  { %v2210_v27 = vrot.slane %v2209_v41, 4  ;;  %v2141_v51 = vadd.f32 %v2140_v5, %v2139_v37  ;;  %v2192_v3 = vrot.slane %v2191_v48, 2  ;;  %v2131_v7 = vadd.f32 %v2130_v44, %v2129_v58 }
0x142f   :  { %v2151_v40 = vpop.xlane.xlu0 %2150 }
0x1430   :  { %v2152_v0 = vrot.slane %v2151_v40, 4  ;;  %v2211_v62 = vadd.f32 %v2210_v27, %v2209_v41  ;;  %v2142_v60 = vrot.slane %v2141_v51, 2  ;;  %v2193_v46 = vadd.f32 %v2192_v3, %v2191_v48 }
0x1431   :  { %v2132_v50 = vrot.slane %v2131_v7, 1 }
0x1432   :  { %v2153_v52 = vadd.f32 %v2152_v0, %v2151_v40  ;;  %v2212_v15 = vrot.slane %v2211_v62, 2  ;;  %v2143_v49 = vadd.f32 %v2142_v60, %v2141_v51  ;;  %v2194_v57 = vrot.slane %v2193_v46, 1 }
0x1433   :  { %v2163_v45 = vpop.xlane.xlu0 %2162  ;;  %v2133_v56 = vadd.f32 %v2132_v50, %v2131_v7 }
0x1434   :  { %v2164_v28 = vrot.slane %v2163_v45, 4  ;;  %v2154_v38 = vrot.slane %v2153_v52, 2  ;;  %v2213_v35 = vadd.f32 %v2212_v15, %v2211_v62  ;;  %v2144_v24 = vrot.slane %v2143_v49, 1 }
0x1435   :  { %v2195_v53 = vadd.f32 %v2194_v57, %v2193_v46 }
0x1436   :  { %v2165_v63 = vadd.f32 %v2164_v28, %v2163_v45  ;;  %v2155_v16 = vadd.f32 %v2154_v38, %v2153_v52  ;;  %v2214_v61 = vrot.slane %v2213_v35, 1  ;;  %v2145_v22 = vadd.f32 %v2144_v24, %v2143_v49 }
0x1437   :  { %v2179_v55 = vpop.xlane.xlu0 %2178 }
0x1438   :  { %v2180_v8 = vrot.slane %v2179_v55, 4  ;;  %v2166_v47 = vrot.slane %v2165_v63, 2  ;;  %v2156_v59 = vrot.slane %v2155_v16, 1  ;;  %v2215_v25 = vadd.f32 %v2214_v61, %v2213_v35 }
0x1439   :  { %v2171_v26 = vsel %vm2170_vm4, %v2133_v56, %v2145_v22 }
0x143a   :  { %v2181_v42 = vadd.f32 %v2180_v8, %v2179_v55  ;;  %v2167_v19 = vadd.f32 %v2166_v47, %v2165_v63  ;;  %v2157_v29 = vadd.f32 %v2156_v59, %v2155_v16 }
0x143b   :  { %v2199_v6 = vpop.xlane.xlu0 %2198 }
0x143c   :  { %v2182_v39 = vrot.slane %v2181_v42, 2  ;;  %v2200_v11 = vrot.slane %v2199_v6, 4  ;;  %v2168_v21 = vrot.slane %v2167_v19, 1  ;;  %v2173_v31 = vsel %vm2172_vm5, %v2171_v26, %v2157_v29 }
0x143e   :  { %v2183_v4 = vadd.f32 %v2182_v39, %v2181_v42  ;;  %v2201_v13 = vadd.f32 %v2200_v11, %v2199_v6  ;;  %v2169_v54 = vadd.f32 %v2168_v21, %v2167_v19 }
0x1440   :  { %v2184_v20 = vrot.slane %v2183_v4, 1  ;;  %v2202_v9 = vrot.slane %v2201_v13, 2  ;;  %v2175_v36 = vsel %vm2174_vm6, %v2173_v31, %v2169_v54 }
0x1442   :  { %v2203_v17 = vadd.f32 %v2202_v9, %v2201_v13  ;;  %v2185_v14 = vadd.f32 %v2184_v20, %v2183_v4 }
0x1444   :  { %v2204_v10 = vrot.slane %v2203_v17, 1  ;;  %v2216_v2 = vsel %vm2170_vm4, %v2185_v14, %v2195_v53 }
0x1446   :  { %v2205_v23 = vadd.f32 %v2204_v10, %v2203_v17 }
0x1448   :  { %v2217_v18 = vsel %vm2172_vm5, %v2216_v2, %v2205_v23 }
0x1449   :  { %v2218_v30 = vsel %vm2174_vm6, %v2217_v18, %v2215_v25 }
0x144a   :  { %v2220_v32 = vrot.slane %v2218_v30, 7 }
0x144c   :  { %v2223_v12 = vsel %vm2222_vm7, %v2175_v36, %v2220_v32 }
0x144d   :  { %v2231_v33 = vadd.f32 %v2380_v34, %v2223_v12 }
0x144f   :  { %2233 = vst.msk [vmem:[#allocation2] sm:$0x3] %vm2232_vm8, %v2231_v33 }
0x1450   :  { %2725 = shalt.err (!%p2722_p4)
}
0x1451   :  { %s2726_s23 = scalar_lea.hbm %s3495_s17, 32 }
0x1452   :  { %p2727_p5 = scmp.ne.s32.totalorder %s3495_s17, %s2726_s23  ;;  %p2730_p6 = scmp.lt.u32.totalorder %s2726_s23, %s3495_s17 }
0x1454   :  { %p2732_p7 = pnand %p2730_p6, %p2727_p5 }
0x1456   :  { %2735 = shalt.err (!%p2732_p7)
}
0x1457   :  { %2243 = dma.vmem_to_hbm [thread:$0]  %s2241_s9, 32, %s3495_s17, [#allocation3]  }
0x1458   :  { %2736 = dma.done.wait [#allocation3], 32  }
0x1459   :  { %2737 = vsyncadd [#allocation3], 4294967264 }
0x145a   :  { %2247 = vsyncpa [#allocation3], 1 }

</bundles_post_ra>
